<compile_context>
chip_gen: v7x
topology: tpu7x:2x2x1
jax: 0.10.0
libtpu: 0.0.40
codegen_flags: <defaults>
</compile_context>

<pallas_src>
import jax
import jax.numpy as jnp
from jax.experimental import pallas as pl
from jax.experimental.pallas import tpu as pltpu

LN_EPS = 1e-5  # PyTorch nn.LayerNorm default eps


def _fused_epilogue(y_f32, gb, out_dtype):
    """ReLU + LayerNorm (biased variance, per-row) + affine, all in f32."""
    y = jnp.maximum(y_f32, 0.0)
    mean = jnp.mean(y, axis=-1, keepdims=True)
    var = jnp.mean(jnp.square(y - mean), axis=-1, keepdims=True)
    y_hat = (y - mean) * jax.lax.rsqrt(var + LN_EPS)
    out = y_hat * gb[0:1, :] + gb[1:2, :]  # gamma row, beta row
    return out.astype(out_dtype)


def mlp_kernel(x_ref, wt_ref, gb_ref, o_ref):
    # Full weight resident: [tb, H] @ [H, H] -> f32 on the MXU, fused epilogue.
    y = jnp.dot(x_ref[...], wt_ref[...], preferred_element_type=jnp.float32)
    o_ref[...] = _fused_epilogue(y, gb_ref[...], o_ref.dtype)


def mlp_kernel_ktiled(x_ref, wt_ref, gb_ref, o_ref, acc_ref):
    # K-tiled path: accumulate partial products in a [tb, H] f32 scratch, apply
    # ReLU + LayerNorm only once the full contraction row is available.
    k = pl.program_id(1)

    @pl.when(k == 0)
    def _init():
        acc_ref[...] = jnp.zeros_like(acc_ref)

    acc_ref[...] += jnp.dot(x_ref[...], wt_ref[...],
                            preferred_element_type=jnp.float32)

    @pl.when(k == pl.num_programs(1) - 1)
    def _finalize():
        o_ref[...] = _fused_epilogue(acc_ref[...], gb_ref[...], o_ref.dtype)


def _default_vmem_limit_bytes():
    # ~75% of physical VMEM: 96 MiB on v5e/v6e (128 MiB), 48 MiB on v7x (64 MiB).
    try:
        cap = int(pltpu.get_tpu_info().vmem_capacity_bytes)
    except Exception:
        cap = 64 * 1024 * 1024
    return (cap * 3) // 4


def prepare_params(w, gamma, beta, matmul_dtype=jnp.bfloat16):
    """One-time parameter prep (hoisted out of the per-call forward path):
    transpose the PyTorch-layout [H_out, H_in] weight to [H_in, H_out] and cast
    it to the matmul dtype; pack gamma/beta into a single [2, H] f32 tensor."""
    wt = jnp.asarray(w).T.astype(matmul_dtype)
    gb = jnp.stack([jnp.asarray(gamma), jnp.asarray(beta)]).astype(jnp.float32)
    return wt, gb


def mlp_forward(x, wt, gamma_beta, *, block_b=256, block_k=None,
                vmem_limit_bytes=None):
    """x: [B, H]; wt: [H, H] pre-transposed weight; gamma_beta: [2, H]."""
    B, H = x.shape
    assert wt.shape == (H, H)
    assert gamma_beta.shape == (2, H)

    out_dtype = x.dtype
    x_mm = x.astype(wt.dtype)          # bf16 matmul operands by default
    gb = gamma_beta.astype(jnp.float32)

    # Batch tile: as large as possible (MXU utilization + fewer grid steps),
    # multiple of 8 (f32 sublane tiling) unless it covers the whole batch.
    block_b = min(block_b, B)
    if block_b != B:
        block_b = max(8, (block_b // 8) * 8)

    if vmem_limit_bytes is None:
        vmem_limit_bytes = _default_vmem_limit_bytes()

    # Invariant blocks (index_map always (0, 0)) only need a single VMEM buffer.
    invariant = pl.Buffered(1)

    # Use the K-tiled accumulator path when the resident weight would blow the
    # VMEM budget (relevant on v7x / large H), or when explicitly requested.
    w_bytes = H * H * jnp.dtype(wt.dtype).itemsize
    use_ktiled = (block_k is not None) or (w_bytes > 40 * 1024 * 1024)

    if not use_ktiled:
        grid = (pl.cdiv(B, block_b),)
        return pl.pallas_call(
            mlp_kernel,
            out_shape=jax.ShapeDtypeStruct((B, H), out_dtype),
            grid_spec=pltpu.PrefetchScalarGridSpec(
                num_scalar_prefetch=0,
                grid=grid,
                in_specs=[
                    pl.BlockSpec((block_b, H), lambda i: (i, 0)),
                    pl.BlockSpec((H, H), lambda i: (0, 0),
                                 pipeline_mode=invariant),
                    pl.BlockSpec((2, H), lambda i: (0, 0),
                                 pipeline_mode=invariant),
                ],
                out_specs=pl.BlockSpec((block_b, H), lambda i: (i, 0)),
            ),
            compiler_params=pltpu.CompilerParams(
                dimension_semantics=("parallel",),
                vmem_limit_bytes=vmem_limit_bytes,
            ),
        )(x_mm, wt, gb)

    # ---- K-tiled path (weight streamed in (block_k, H) slabs) ----
    if block_k is None:
        block_k = 512
    block_k = min(block_k, H)
    assert H % block_k == 0, "contraction dim must be divisible by block_k"
    # Note: if H ever grows so large that the [block_b, H] f32 accumulator does
    # not fit, switch to a two-pass LayerNorm (N-tiled matmul + light LN pass)
    # rather than shrinking block_b below 128.

    grid = (pl.cdiv(B, block_b), H // block_k)
    return pl.pallas_call(
        mlp_kernel_ktiled,
        out_shape=jax.ShapeDtypeStruct((B, H), out_dtype),
        grid_spec=pltpu.PrefetchScalarGridSpec(
            num_scalar_prefetch=0,
            grid=grid,
            in_specs=[
                pl.BlockSpec((block_b, block_k), lambda i, k: (i, k)),
                pl.BlockSpec((block_k, H), lambda i, k: (k, 0)),
                pl.BlockSpec((2, H), lambda i, k: (0, 0),
                             pipeline_mode=invariant),
            ],
            out_specs=pl.BlockSpec((block_b, H), lambda i, k: (i, 0)),
            scratch_shapes=[pltpu.VMEM((block_b, H), jnp.float32)],
        ),
        compiler_params=pltpu.CompilerParams(
            dimension_semantics=("parallel", "arbitrary"),
            vmem_limit_bytes=vmem_limit_bytes,
        ),
    )(x_mm, wt, gb)


def reference_forward(x, w, gamma, beta, matmul_dtype=jnp.float32):
    y = jnp.dot(x.astype(matmul_dtype), w.T.astype(matmul_dtype),
                preferred_element_type=jnp.float32,
                precision=jax.lax.Precision.HIGHEST)
    y = jnp.maximum(y, 0.0)
    mean = jnp.mean(y, axis=-1, keepdims=True)
    var = jnp.mean(jnp.square(y - mean), axis=-1, keepdims=True)
    y_hat = (y - mean) * jax.lax.rsqrt(var + LN_EPS)
    return (y_hat * gamma + beta).astype(x.dtype)


if __name__ == "__main__":
    key = jax.random.PRNGKey(0)
    B, H = 256, 256  # small but tile-friendly (multiples of 128)

    kx, kw, kg, kb = jax.random.split(key, 4)
    x = jax.random.normal(kx, (B, H), dtype=jnp.float32)
    # nn.Linear(H, H, bias=False) weight and nn.LayerNorm(H) params.
    w = jax.random.normal(kw, (H, H), dtype=jnp.float32) * (1.0 / jnp.sqrt(H))
    gamma = 1.0 + 0.1 * jax.random.normal(kg, (H,), dtype=jnp.float32)
    beta = 0.1 * jax.random.normal(kb, (H,), dtype=jnp.float32)

    # 1) Default fast path: bf16 matmul operands, f32 accumulation + f32 LN.
    wt_bf16, gb = prepare_params(w, gamma, beta, matmul_dtype=jnp.bfloat16)
    out_bf16 = jax.block_until_ready(mlp_forward(x, wt_bf16, gb))
    ref_bf16 = reference_forward(x, w, gamma, beta, matmul_dtype=jnp.bfloat16)
    assert out_bf16.shape == (B, H)
    assert jnp.allclose(out_bf16, ref_bf16, atol=2e-2, rtol=2e-2), \
        "bf16 path mismatch vs reference"

    # 2) Full-f32 path with a 128-row batch tile (tight numeric check).
    wt_f32, _ = prepare_params(w, gamma, beta, matmul_dtype=jnp.float32)
    out_f32 = jax.block_until_ready(mlp_forward(x, wt_f32, gb, block_b=128))
    ref_f32 = reference_forward(x, w, gamma, beta, matmul_dtype=jnp.float32)
    assert jnp.allclose(out_f32, ref_f32, atol=2e-3, rtol=2e-3), \
        "f32 path mismatch vs reference"

    # 3) K-tiled accumulator path (the route used when the weight outgrows VMEM).
    out_kt = jax.block_until_ready(
        mlp_forward(x, wt_f32, gb, block_b=128, block_k=128))
    assert jnp.allclose(out_kt, ref_f32, atol=2e-3, rtol=2e-3), \
        "k-tiled path mismatch vs reference"

    print("KERNEL_OK")
</pallas_src>

<mosaic_0001>
module attributes {stable_mosaic.version = 11 : i64} {
  func.func @mlp_kernel(%arg0: i32, %arg1: memref<256x256xbf16, #tpu.memory_space<vmem>>, %arg2: memref<256x256xbf16, #tpu.memory_space<vmem>>, %arg3: memref<2x256xf32, #tpu.memory_space<vmem>>, %arg4: memref<256x256xf32, #tpu.memory_space<vmem>>) attributes {dimension_semantics = [#tpu.dimension_semantics<parallel>], iteration_bounds = array<i64: 1>, scalar_prefetch = 0 : i64, scratch_operands = 0 : i64, tpu.core_type = #tpu.core_type<tc>, window_params = [{transform_indices = @transform_0, window_bounds = array<i64: 256, 256>}, {pipeline_mode = #tpu.pipeline_mode<synchronous>, transform_indices = @transform_1, window_bounds = array<i64: 256, 256>}, {pipeline_mode = #tpu.pipeline_mode<synchronous>, transform_indices = @transform_2, window_bounds = array<i64: 2, 256>}, {transform_indices = @transform_3, window_bounds = array<i64: 256, 256>}]} {
    %c0 = arith.constant 0 : index
    %c0_0 = arith.constant 0 : index
    %0 = vector.load %arg1[%c0, %c0_0] : memref<256x256xbf16, #tpu.memory_space<vmem>>, vector<256x256xbf16>
    %c0_1 = arith.constant 0 : index
    %c0_2 = arith.constant 0 : index
    %1 = vector.load %arg2[%c0_1, %c0_2] : memref<256x256xbf16, #tpu.memory_space<vmem>>, vector<256x256xbf16>
    %cst = arith.constant dense<0.000000e+00> : vector<256x256xf32>
    %2 = tpu.matmul %0, %1, %cst {dimension_numbers = #tpu.dot_dimension_numbers<[1], [0], [0], [1], [0, 0, 1, 1], [], []>} : vector<256x256xbf16>, vector<256x256xbf16>, vector<256x256xf32> -> vector<256x256xf32>
    %c0_3 = arith.constant 0 : index
    %c0_4 = arith.constant 0 : index
    %3 = vector.load %arg3[%c0_3, %c0_4] : memref<2x256xf32, #tpu.memory_space<vmem>>, vector<2x256xf32>
    %cst_5 = arith.constant 0.000000e+00 : f32
    %4 = vector.broadcast %cst_5 : f32 to vector<256x256xf32>
    %5 = arith.maximumf %2, %4 : vector<256x256xf32>
    %cst_6 = arith.constant dense<0.000000e+00> : vector<256xf32>
    %6 = vector.multi_reduction <add>, %5, %cst_6 [1] : vector<256x256xf32> to vector<256xf32>
    %7 = vector.shape_cast %6 : vector<256xf32> to vector<256x1xf32>
    %cst_7 = arith.constant 2.560000e+02 : f32
    %8 = vector.broadcast %cst_7 : f32 to vector<256x1xf32>
    %9 = arith.divf %7, %8 : vector<256x1xf32>
    %10 = vector.broadcast %9 : vector<256x1xf32> to vector<256x256xf32>
    %11 = arith.subf %5, %10 : vector<256x256xf32>
    %12 = arith.mulf %11, %11 : vector<256x256xf32>
    %cst_8 = arith.constant dense<0.000000e+00> : vector<256xf32>
    %13 = vector.multi_reduction <add>, %12, %cst_8 [1] : vector<256x256xf32> to vector<256xf32>
    %14 = vector.shape_cast %13 : vector<256xf32> to vector<256x1xf32>
    %cst_9 = arith.constant 2.560000e+02 : f32
    %15 = vector.broadcast %cst_9 : f32 to vector<256x1xf32>
    %16 = arith.divf %14, %15 : vector<256x1xf32>
    %17 = vector.broadcast %9 : vector<256x1xf32> to vector<256x256xf32>
    %18 = arith.subf %5, %17 : vector<256x256xf32>
    %cst_10 = arith.constant 9.99999974E-6 : f32
    %19 = vector.broadcast %cst_10 : f32 to vector<256x1xf32>
    %20 = arith.addf %16, %19 : vector<256x1xf32>
    %21 = math.rsqrt %20 : vector<256x1xf32>
    %22 = vector.broadcast %21 : vector<256x1xf32> to vector<256x256xf32>
    %23 = arith.mulf %18, %22 : vector<256x256xf32>
    %24 = vector.extract_strided_slice %3 {offsets = [0, 0], sizes = [1, 256], strides = [1, 1]} : vector<2x256xf32> to vector<1x256xf32>
    %25 = vector.broadcast %24 : vector<1x256xf32> to vector<256x256xf32>
    %26 = arith.mulf %23, %25 : vector<256x256xf32>
    %27 = vector.extract_strided_slice %3 {offsets = [1, 0], sizes = [1, 256], strides = [1, 1]} : vector<2x256xf32> to vector<1x256xf32>
    %28 = vector.broadcast %27 : vector<1x256xf32> to vector<256x256xf32>
    %29 = arith.addf %26, %28 : vector<256x256xf32>
    %c0_11 = arith.constant 0 : index
    %c0_12 = arith.constant 0 : index
    %30 = vector.load %arg4[%c0_11, %c0_12] : memref<256x256xf32, #tpu.memory_space<vmem>>, vector<256x256xf32>
    tpu.vector_store %arg4[%c0_11, %c0_12], %29 {strides = array<i32>} : memref<256x256xf32, #tpu.memory_space<vmem>>, vector<256x256xf32>,
    return
  }
  func.func @transform_0(%arg0: i32) -> (i32, i32) {
    %c0_i32 = arith.constant 0 : i32
    %c0_i32_0 = arith.constant 0 : i32
    return %arg0, %c0_i32 : i32, i32
  }
  func.func @transform_1(%arg0: i32) -> (i32, i32) {
    %c0_i32 = arith.constant 0 : i32
    %c0_i32_0 = arith.constant 0 : i32
    %c0_i32_1 = arith.constant 0 : i32
    return %c0_i32, %c0_i32_0 : i32, i32
  }
  func.func @transform_2(%arg0: i32) -> (i32, i32) {
    %c0_i32 = arith.constant 0 : i32
    %c0_i32_0 = arith.constant 0 : i32
    %c0_i32_1 = arith.constant 0 : i32
    return %c0_i32, %c0_i32_0 : i32, i32
  }
  func.func @transform_3(%arg0: i32) -> (i32, i32) {
    %c0_i32 = arith.constant 0 : i32
    %c0_i32_0 = arith.constant 0 : i32
    return %arg0, %c0_i32 : i32, i32
  }
}

</mosaic_0001>

<bundles_post_ra>
// kernel: tpu_custom_call.1
= control target key start
LH: loop header
LB: loop body
LE: loop exit
PB: predicated region body
PF: predicated region fallthrough
CT: control target
= control target key end

     0   :  { %8 = vsyncpa [#allocation3], 0  ;;  %s2756_s0 = inlined_call_operand.hbm [shape: bf16[256,256], index: 0, kind: input, shape index: {}]   ;;  %s2757_s1 = inlined_call_operand.hbm [shape: bf16[256,256], index: 1, kind: input, shape index: {}]   ;;  %s2758_s2 = inlined_call_operand.vmem [shape: f32[2,256], index: 2, kind: input, shape index: {}]   ;;  %s2759_s3 = inlined_call_operand.hbm [shape: f32[256,256], index: 3, kind: output, shape index: {}]  }
   0x1   :  { %9 = vsyncpa [#allocation6], 0 }
   0x2   :  { %10 = vsyncpa [#allocation4], 0  ;;  %s1780_s12 = smov [#allocation2]   ;;  %s1708_s16 = scalar_lea.hbm %s2756_s0, 4096 }
   0x3   :  { %s16_s13 = sshll.u32 %s1780_s12, 4  ;;  %p1709_p0 = scmp.ne.s32.totalorder %s2756_s0, %s1708_s16  ;;  %s17_s13 = int_to_ptr.vmem [resolvable:$true] %s16_s13 }
   0x4   :  { %p1712_p1 = scmp.lt.u32.totalorder %s1708_s16, %s2756_s0 }
   0x6   :  { %p1714_p2 = pnand %p1712_p1, %p1709_p0 }
   0x8   :  { %1717 = shalt.err (!%p1714_p2)
}
   0x9   :  { %s1718_s21 = scalar_lea.vmem %s17_s13, 4096  ;;  %p1723_p4 = scmp.lt.s32.totalorder %s17_s13, %s17_s13 }
   0xa   :  { %p1719_p3 = scmp.ne.s32.totalorder %s17_s13, %s1718_s21  ;;  %p1724_p5 = scmp.lt.s32.totalorder %s1718_s21, %s1718_s21 }
   0xc   :  { %p1725_p6 = por %p1724_p5, %p1723_p4 }
   0xe   :  { %p1726_p7 = pnand %p1725_p6, %p1719_p3 }
  0x10   :  { %1729 = shalt.err (!%p1726_p7)
}
  0x11   :  { %s1781_s22 = smov 128   ;;  %s1782_s23 = smov 8  }
  0x12   :  { %22 = dma.hbm_to_vmem [thread:$0]  %s2756_s0, 4096, %s17_s13, [#allocation3], %s1781_s22, %s1781_s22, %s1782_s23  }
  0x13   :  { %s1783_s26 = smov [#allocation5]   ;;  %s1730_s30 = scalar_lea.hbm %s2757_s1, 4096 }
  0x14   :  { %s28_s27 = sshll.u32 %s1783_s26, 4  ;;  %p1731_p8 = scmp.ne.s32.totalorder %s2757_s1, %s1730_s30  ;;  %s29_s27 = int_to_ptr.vmem [resolvable:$true] %s28_s27 }
  0x15   :  { %p1734_p9 = scmp.lt.u32.totalorder %s1730_s30, %s2757_s1 }
  0x17   :  { %p1736_p10 = pnand %p1734_p9, %p1731_p8 }
  0x19   :  { %1739 = shalt.err (!%p1736_p10)
}
  0x1a   :  { %s1740_s8 = scalar_lea.vmem %s29_s27, 4096  ;;  %p1745_p12 = scmp.lt.s32.totalorder %s29_s27, %s29_s27 }
  0x1b   :  { %p1741_p11 = scmp.ne.s32.totalorder %s29_s27, %s1740_s8  ;;  %p1746_p13 = scmp.lt.s32.totalorder %s1740_s8, %s1740_s8 }
  0x1d   :  { %p1747_p0 = por %p1746_p13, %p1745_p12 }
  0x1f   :  { %p1748_p1 = pnand %p1747_p0, %p1741_p11 }
  0x21   :  { %1751 = shalt.err (!%p1748_p1)
}
  0x22   :  { %34 = dma.hbm_to_vmem [thread:$0]  %s2757_s1, 4096, %s29_s27, [#allocation6], %s1781_s22, %s1781_s22, %s1782_s23  }
  0x23   :  { %1774 = dma.done.wait [#allocation3], 4096  }
  0x24   :  { %1775 = vsyncadd [#allocation3], 4294963200 }
  0x25   :  { %1776 = dma.done.wait [#allocation6], 4096  }
  0x26   :  { %1777 = vsyncadd [#allocation6], 4294963200  ;;  %v1548_v0 = vld [vmem:[#allocation5 + $0x4] ss:$8 sps:$4 sm:$0xff]   ;;  %v1550_v1 = vld [vmem:[#allocation5] ss:$8 sps:$4 sm:$0xff]  }
  0x27   :  { %427 = vmatprep.subr.bf16.mxu0 %v1548_v0  ;;  %1509 = vmatprep.subr.bf16.mxu1 %v1548_v0  ;;  %v1551_v2 = vld [vmem:[#allocation5 + $0x14] ss:$8 sps:$4 sm:$0xff]   ;;  %v1553_v3 = vld [vmem:[#allocation5 + $0x10] ss:$8 sps:$4 sm:$0xff]   ;;  %v1554_v4 = vld [vmem:[#allocation5 + $0x24] ss:$8 sps:$4 sm:$0xff]  }
  0x28   :  { %428 = vmatpush1.bf16.msra.mxu0 %v1550_v1  ;;  %1525 = vmatpush1.bf16.msra.mxu1 %v1550_v1  ;;  %v1556_v5 = vld [vmem:[#allocation5 + $0x20] ss:$8 sps:$4 sm:$0xff]   ;;  %v1557_v6 = vld [vmem:[#allocation5 + $0x34] ss:$8 sps:$4 sm:$0xff]   ;;  %v1559_v7 = vld [vmem:[#allocation5 + $0x30] ss:$8 sps:$4 sm:$0xff]  }
  0x29   :  { %429 = vmatprep.subr.bf16.mxu0 %v1551_v2  ;;  %1510 = vmatprep.subr.bf16.mxu1 %v1551_v2  ;;  %v1560_v8 = vld [vmem:[#allocation5 + $0x44] ss:$8 sps:$4 sm:$0xff]   ;;  %v1562_v9 = vld [vmem:[#allocation5 + $0x40] ss:$8 sps:$4 sm:$0xff]   ;;  %v1563_v10 = vld [vmem:[#allocation5 + $0x54] ss:$8 sps:$4 sm:$0xff]  }
  0x2a   :  { %v1565_v11 = vld [vmem:[#allocation5 + $0x50] ss:$8 sps:$4 sm:$0xff]   ;;  %v1566_v12 = vld [vmem:[#allocation5 + $0x64] ss:$8 sps:$4 sm:$0xff]   ;;  %v1568_v14 = vld [vmem:[#allocation5 + $0x60] ss:$8 sps:$4 sm:$0xff]  }
  0x2b   :  { %v1598_v13 = vld [vmem:[#allocation2 + $0x4] ss:$8 sps:$4 sm:$0xff]   ;;  %v1569_v16 = vld [vmem:[#allocation5 + $0x74] ss:$8 sps:$4 sm:$0xff]   ;;  %v1571_v17 = vld [vmem:[#allocation5 + $0x70] ss:$8 sps:$4 sm:$0xff]  }
  0x2c   :  { %430 = vmatpush1.bf16.msra.mxu0 %v1553_v3  ;;  %1526 = vmatpush1.bf16.msra.mxu1 %v1553_v3  ;;  %v1601_v15 = vld [vmem:[#allocation2 + $0x84] ss:$8 sps:$4 sm:$0xff]   ;;  %v1574_v19 = vld [vmem:[#allocation5 + $0x80] ss:$8 sps:$4 sm:$0xff]   ;;  %v1575_v20 = vld [vmem:[#allocation5 + $0x94] ss:$8 sps:$4 sm:$0xff]  }
  0x2d   :  { %431 = vmatprep.subr.bf16.mxu0 %v1554_v4  ;;  %1511 = vmatprep.subr.bf16.mxu1 %v1554_v4  ;;  %v1572_v18 = vld [vmem:[#allocation5 + $0x84] ss:$8 sps:$4 sm:$0xff]   ;;  %v1577_v21 = vld [vmem:[#allocation5 + $0x90] ss:$8 sps:$4 sm:$0xff]   ;;  %v1580_v23 = vld [vmem:[#allocation5 + $0xa0] ss:$8 sps:$4 sm:$0xff]  }
  0x2e   :  { %459 = vmatprep.mubr.bf16.mxu0 %v1598_v13  ;;  %539 = vmatprep.mubr.bf16.mxu1 %v1601_v15  ;;  %v1578_v22 = vld [vmem:[#allocation5 + $0xa4] ss:$8 sps:$4 sm:$0xff]   ;;  %v1581_v24 = vld [vmem:[#allocation5 + $0xb4] ss:$8 sps:$4 sm:$0xff]   ;;  %v1583_v25 = vld [vmem:[#allocation5 + $0xb0] ss:$8 sps:$4 sm:$0xff]  }
  0x2f   :  { %v1584_v26 = vld [vmem:[#allocation5 + $0xc4] ss:$8 sps:$4 sm:$0xff]   ;;  %v1586_v27 = vld [vmem:[#allocation5 + $0xc0] ss:$8 sps:$4 sm:$0xff]   ;;  %v1587_v28 = vld [vmem:[#allocation5 + $0xd4] ss:$8 sps:$4 sm:$0xff]  }
  0x30   :  { %432 = vmatpush1.bf16.msra.mxu0 %v1556_v5  ;;  %1527 = vmatpush1.bf16.msra.mxu1 %v1556_v5  ;;  %v1589_v29 = vld [vmem:[#allocation5 + $0xd0] ss:$8 sps:$4 sm:$0xff]   ;;  %v1590_v30 = vld [vmem:[#allocation5 + $0xe4] ss:$8 sps:$4 sm:$0xff]   ;;  %v1592_v31 = vld [vmem:[#allocation5 + $0xe0] ss:$8 sps:$4 sm:$0xff]  }
  0x31   :  { %433 = vmatprep.subr.bf16.mxu0 %v1557_v6  ;;  %1512 = vmatprep.subr.bf16.mxu1 %v1557_v6  ;;  %v1593_v32 = vld [vmem:[#allocation5 + $0xf4] ss:$8 sps:$4 sm:$0xff]   ;;  %v1595_v33 = vld [vmem:[#allocation5 + $0xf0] ss:$8 sps:$4 sm:$0xff]   ;;  %v1596_v34 = vld [vmem:[#allocation2] ss:$8 sps:$4 sm:$0xff]  }
  0x32   :  { %v1599_v35 = vld [vmem:[#allocation2 + $0x80] ss:$8 sps:$4 sm:$0xff]   ;;  %v1602_v36 = vld [vmem:[#allocation2 + $0x14] ss:$8 sps:$4 sm:$0xff]   ;;  %v1604_v38 = vld [vmem:[#allocation2 + $0x10] ss:$8 sps:$4 sm:$0xff]  }
  0x33   :  { %v1605_v37 = vld [vmem:[#allocation2 + $0x94] ss:$8 sps:$4 sm:$0xff]   ;;  %v1607_v39 = vld [vmem:[#allocation2 + $0x90] ss:$8 sps:$4 sm:$0xff]   ;;  %v1608_v40 = vld [vmem:[#allocation2 + $0x24] ss:$8 sps:$4 sm:$0xff]  }
  0x34   :  { %434 = vmatpush1.bf16.msra.mxu0 %v1559_v7  ;;  %1528 = vmatpush1.bf16.msra.mxu1 %v1559_v7  ;;  %v1611_v41 = vld [vmem:[#allocation2 + $0xa4] ss:$8 sps:$4 sm:$0xff]   ;;  %v1610_v42 = vld [vmem:[#allocation2 + $0x20] ss:$8 sps:$4 sm:$0xff]   ;;  %v1614_v44 = vld [vmem:[#allocation2 + $0x34] ss:$8 sps:$4 sm:$0xff]  }
  0x35   :  { %435 = vmatprep.subr.bf16.mxu0 %v1560_v8  ;;  %1513 = vmatprep.subr.bf16.mxu1 %v1560_v8  ;;  %v1613_v43 = vld [vmem:[#allocation2 + $0xa0] ss:$8 sps:$4 sm:$0xff]   ;;  %v1617_v45 = vld [vmem:[#allocation2 + $0xb4] ss:$8 sps:$4 sm:$0xff]   ;;  %v1616_v46 = vld [vmem:[#allocation2 + $0x30] ss:$8 sps:$4 sm:$0xff]  }
  0x36   :  { %v1619_v47 = vld [vmem:[#allocation2 + $0xb0] ss:$8 sps:$4 sm:$0xff]   ;;  %v1620_v48 = vld [vmem:[#allocation2 + $0x44] ss:$8 sps:$4 sm:$0xff]   ;;  %v1622_v50 = vld [vmem:[#allocation2 + $0x40] ss:$8 sps:$4 sm:$0xff]  }
  0x37   :  { %v1623_v49 = vld [vmem:[#allocation2 + $0xc4] ss:$8 sps:$4 sm:$0xff]   ;;  %v1625_v51 = vld [vmem:[#allocation2 + $0xc0] ss:$8 sps:$4 sm:$0xff]   ;;  %v1626_v52 = vld [vmem:[#allocation2 + $0x54] ss:$8 sps:$4 sm:$0xff]  }
  0x38   :  { %436 = vmatpush1.bf16.msra.mxu0 %v1562_v9  ;;  %1529 = vmatpush1.bf16.msra.mxu1 %v1562_v9  ;;  %v1629_v53 = vld [vmem:[#allocation2 + $0xd4] ss:$8 sps:$4 sm:$0xff]   ;;  %v1628_v54 = vld [vmem:[#allocation2 + $0x50] ss:$8 sps:$4 sm:$0xff]   ;;  %v1632_v56 = vld [vmem:[#allocation2 + $0x64] ss:$8 sps:$4 sm:$0xff]  }
  0x39   :  { %437 = vmatprep.subr.bf16.mxu0 %v1563_v10  ;;  %1514 = vmatprep.subr.bf16.mxu1 %v1563_v10  ;;  %v1631_v55 = vld [vmem:[#allocation2 + $0xd0] ss:$8 sps:$4 sm:$0xff]   ;;  %v1635_v57 = vld [vmem:[#allocation2 + $0xe4] ss:$8 sps:$4 sm:$0xff]   ;;  %v1634_v58 = vld [vmem:[#allocation2 + $0x60] ss:$8 sps:$4 sm:$0xff]  }
  0x3a   :  { %v1637_v59 = vld [vmem:[#allocation2 + $0xe0] ss:$8 sps:$4 sm:$0xff]   ;;  %v1638_v60 = vld [vmem:[#allocation2 + $0x74] ss:$8 sps:$4 sm:$0xff]   ;;  %v1640_v62 = vld [vmem:[#allocation2 + $0x70] ss:$8 sps:$4 sm:$0xff]  }
  0x3b   :  { %v1641_v61 = vld [vmem:[#allocation2 + $0xf4] ss:$8 sps:$4 sm:$0xff]   ;;  %v1643_v63 = vld [vmem:[#allocation2 + $0xf0] ss:$8 sps:$4 sm:$0xff]  }
  0x3c   :  { %438 = vmatpush1.bf16.msra.mxu0 %v1565_v11  ;;  %1530 = vmatpush1.bf16.msra.mxu1 %v1565_v11 }
  0x3d   :  { %439 = vmatprep.subr.bf16.mxu0 %v1566_v12  ;;  %1515 = vmatprep.subr.bf16.mxu1 %v1566_v12 }
  0x40   :  { %440 = vmatpush1.bf16.msra.mxu0 %v1568_v14  ;;  %1531 = vmatpush1.bf16.msra.mxu1 %v1568_v14 }
  0x41   :  { %441 = vmatprep.subr.bf16.mxu0 %v1569_v16  ;;  %1516 = vmatprep.subr.bf16.mxu1 %v1569_v16 }
  0x44   :  { %442 = vmatpush1.bf16.msra.mxu0 %v1571_v17  ;;  %1532 = vmatpush1.bf16.msra.mxu1 %v1571_v17 }
  0x45   :  { %443 = vmatprep.subr.bf16.mxu0 %v1572_v18  ;;  %1517 = vmatprep.subr.bf16.mxu1 %v1572_v18 }
  0x48   :  { %444 = vmatpush1.bf16.msra.mxu0 %v1574_v19  ;;  %1533 = vmatpush1.bf16.msra.mxu1 %v1574_v19 }
  0x49   :  { %445 = vmatprep.subr.bf16.mxu0 %v1575_v20  ;;  %1518 = vmatprep.subr.bf16.mxu1 %v1575_v20 }
  0x4c   :  { %446 = vmatpush1.bf16.msra.mxu0 %v1577_v21  ;;  %1534 = vmatpush1.bf16.msra.mxu1 %v1577_v21 }
  0x4d   :  { %447 = vmatprep.subr.bf16.mxu0 %v1578_v22  ;;  %1519 = vmatprep.subr.bf16.mxu1 %v1578_v22 }
  0x50   :  { %448 = vmatpush1.bf16.msra.mxu0 %v1580_v23  ;;  %1535 = vmatpush1.bf16.msra.mxu1 %v1580_v23 }
  0x51   :  { %449 = vmatprep.subr.bf16.mxu0 %v1581_v24  ;;  %1520 = vmatprep.subr.bf16.mxu1 %v1581_v24 }
  0x54   :  { %450 = vmatpush1.bf16.msra.mxu0 %v1583_v25  ;;  %1536 = vmatpush1.bf16.msra.mxu1 %v1583_v25 }
  0x55   :  { %451 = vmatprep.subr.bf16.mxu0 %v1584_v26  ;;  %1521 = vmatprep.subr.bf16.mxu1 %v1584_v26 }
  0x58   :  { %452 = vmatpush1.bf16.msra.mxu0 %v1586_v27  ;;  %1537 = vmatpush1.bf16.msra.mxu1 %v1586_v27 }
  0x59   :  { %453 = vmatprep.subr.bf16.mxu0 %v1587_v28  ;;  %1522 = vmatprep.subr.bf16.mxu1 %v1587_v28 }
  0x5c   :  { %454 = vmatpush1.bf16.msra.mxu0 %v1589_v29  ;;  %1538 = vmatpush1.bf16.msra.mxu1 %v1589_v29 }
  0x5d   :  { %455 = vmatprep.subr.bf16.mxu0 %v1590_v30  ;;  %1523 = vmatprep.subr.bf16.mxu1 %v1590_v30 }
  0x60   :  { %456 = vmatpush1.bf16.msra.mxu0 %v1592_v31  ;;  %1539 = vmatpush1.bf16.msra.mxu1 %v1592_v31 }
  0x61   :  { %457 = vmatprep.subr.bf16.mxu0 %v1593_v32  ;;  %1524 = vmatprep.subr.bf16.mxu1 %v1593_v32 }
  0x64   :  { %458 = vmatpush1.bf16.msra.mxu0 %v1595_v33  ;;  %1540 = vmatpush1.bf16.msra.mxu1 %v1595_v33 }
  0x67   :  { %460 = vmatmul.mubr.bf16.vlgmr.msra.gmra.mrb[0].mxu0 %v1596_v34  ;;  %540 = vmatmul.mubr.bf16.vlgmr.msra.gmra.mrb[0].mxu1 %v1599_v35 }
  0x68   :  { %469 = vmatprep.mubr.bf16.mxu0 %v1602_v36  ;;  %549 = vmatprep.mubr.bf16.mxu1 %v1605_v37 }
  0x6f   :  { %470 = vmatmul.mubr.bf16.gmra.mrb[4].mxu0 %v1604_v38  ;;  %550 = vmatmul.mubr.bf16.gmra.mrb[4].mxu1 %v1607_v39 }
  0x70   :  { %479 = vmatprep.mubr.bf16.mxu0 %v1608_v40  ;;  %559 = vmatprep.mubr.bf16.mxu1 %v1611_v41 }
  0x77   :  { %480 = vmatmul.mubr.bf16.gmra.mrb[8].mxu0 %v1610_v42  ;;  %560 = vmatmul.mubr.bf16.gmra.mrb[8].mxu1 %v1613_v43 }
  0x78   :  { %489 = vmatprep.mubr.bf16.mxu0 %v1614_v44  ;;  %569 = vmatprep.mubr.bf16.mxu1 %v1617_v45 }
  0x7f   :  { %490 = vmatmul.mubr.bf16.gmra.mrb[12].mxu0 %v1616_v46  ;;  %570 = vmatmul.mubr.bf16.gmra.mrb[12].mxu1 %v1619_v47 }
  0x80   :  { %499 = vmatprep.mubr.bf16.mxu0 %v1620_v48  ;;  %579 = vmatprep.mubr.bf16.mxu1 %v1623_v49 }
  0x87   :  { %500 = vmatmul.mubr.bf16.gmra.mrb[16].mxu0 %v1622_v50  ;;  %580 = vmatmul.mubr.bf16.gmra.mrb[16].mxu1 %v1625_v51 }
  0x88   :  { %509 = vmatprep.mubr.bf16.mxu0 %v1626_v52  ;;  %589 = vmatprep.mubr.bf16.mxu1 %v1629_v53 }
  0x8f   :  { %510 = vmatmul.mubr.bf16.gmra.mrb[20].mxu0 %v1628_v54  ;;  %590 = vmatmul.mubr.bf16.gmra.mrb[20].mxu1 %v1631_v55 }
  0x90   :  { %519 = vmatprep.mubr.bf16.mxu0 %v1632_v56  ;;  %599 = vmatprep.mubr.bf16.mxu1 %v1635_v57 }
  0x97   :  { %520 = vmatmul.mubr.bf16.gmra.mrb[24].mxu0 %v1634_v58  ;;  %600 = vmatmul.mubr.bf16.gmra.mrb[24].mxu1 %v1637_v59 }
  0x98   :  { %529 = vmatprep.mubr.bf16.mxu0 %v1638_v60  ;;  %609 = vmatprep.mubr.bf16.mxu1 %v1641_v61 }
  0x9f   :  { %530 = vmatmul.mubr.bf16.gmra.mrb[28].mxu0 %v1640_v62  ;;  %610 = vmatmul.mubr.bf16.gmra.mrb[28].mxu1 %v1643_v63 }
 0x13a   :  { %v1831_v0 = vpop.f32.mrb[0].mxu0  ;;  %v1833_v1 = vpop.f32.mrb[0].mxu1 }
 0x13b   :  { %v2805_v2 = vmax.f32 %v1831_v0, 0.0  ;;  %v1836_v3 = vpop.f32.mrb[1].mxu0  ;;  %v1838_v4 = vpop.f32.mrb[1].mxu1  ;;  %v2797_v5 = vmax.f32 %v1833_v1, 0.0 }
 0x13c   :  { %v2804_v6 = vmax.f32 %v1836_v3, 0.0  ;;  %v2796_v7 = vmax.f32 %v1838_v4, 0.0  ;;  %v1843_v8 = vpop.f32.mrb[2].mxu0  ;;  %v1845_v9 = vpop.f32.mrb[2].mxu1 }
 0x13d   :  { %v2795_v10 = vmax.f32 %v1845_v9, 0.0  ;;  %v1848_v11 = vpop.f32.mrb[3].mxu0  ;;  %v1850_v12 = vpop.f32.mrb[3].mxu1  ;;  %v2791_v17 = vmax.f32 %v1843_v8, 0.0 }
 0x13e   :  { %v2792_v13 = vmax.f32 %v1850_v12, 0.0  ;;  %v685_v14 = vadd.f32 %v2804_v6, %v2805_v2  ;;  %v733_v16 = vadd.f32 %v2796_v7, %v2797_v5  ;;  %v2790_v18 = vmax.f32 %v1848_v11, 0.0 }
 0x140   :  { %686 = vadd.xlane.f32.xlu0 %v685_v14  ;;  %v736_v15 = vadd.f32 %v2792_v13, %v2795_v10  ;;  %v688_v33 = vadd.f32 %v2790_v18, %v2791_v17 }
 0x142   :  { %737 = vadd.xlane.f32.xlu1 %v736_v15  ;;  %v1867_v19 = vpop.f32.mrb[4].mxu0  ;;  %v1869_v20 = vpop.f32.mrb[4].mxu1 }
 0x143   :  { %v2789_v21 = vmax.f32 %v1867_v19, 0.0  ;;  %v1872_v22 = vpop.f32.mrb[5].mxu0  ;;  %v1874_v23 = vpop.f32.mrb[5].mxu1  ;;  %v2781_v26 = vmax.f32 %v1869_v20, 0.0 }
 0x144   :  { %v2788_v24 = vmax.f32 %v1872_v22, 0.0  ;;  %734 = vadd.xlane.f32.xlu0 %v733_v16  ;;  %v1877_v25 = vpop.f32.mrb[6].mxu0  ;;  %v2780_v27 = vmax.f32 %v1874_v23, 0.0  ;;  %v1881_v28 = vpop.f32.mrb[6].mxu1 }
 0x145   :  { %v2779_v29 = vmax.f32 %v1877_v25, 0.0  ;;  %v1884_v30 = vpop.f32.mrb[7].mxu0  ;;  %v1886_v31 = vpop.f32.mrb[7].mxu1  ;;  %v2773_v35 = vmax.f32 %v1881_v28, 0.0 }
 0x146   :  { %v2776_v32 = vmax.f32 %v1884_v30, 0.0  ;;  %v691_v34 = vadd.f32 %v2788_v24, %v2789_v21  ;;  %v2772_v36 = vmax.f32 %v1886_v31, 0.0  ;;  %v739_v37 = vadd.f32 %v2780_v27, %v2781_v26 }
 0x148   :  { %689 = vadd.xlane.f32.xlu0 %v688_v33  ;;  %692 = vadd.xlane.f32.xlu1 %v691_v34  ;;  %v694_v38 = vadd.f32 %v2776_v32, %v2779_v29  ;;  %v742_v48 = vadd.f32 %v2772_v36, %v2773_v35 }
 0x14a   :  { %v1907_v39 = vpop.f32.mrb[8].mxu0  ;;  %v1909_v40 = vpop.f32.mrb[8].mxu1 }
 0x14b   :  { %v2775_v41 = vmax.f32 %v1907_v39, 0.0  ;;  %v1912_v42 = vpop.f32.mrb[9].mxu0  ;;  %v1914_v43 = vpop.f32.mrb[9].mxu1  ;;  %v2765_v46 = vmax.f32 %v1909_v40, 0.0 }
 0x14c   :  { %v2774_v44 = vmax.f32 %v1912_v42, 0.0  ;;  %740 = vadd.xlane.f32.xlu0 %v739_v37  ;;  %695 = vadd.xlane.f32.xlu1 %v694_v38  ;;  %v1917_v45 = vpop.f32.mrb[10].mxu0  ;;  %v2764_v47 = vmax.f32 %v1914_v43, 0.0  ;;  %v1925_v49 = vpop.f32.mrb[10].mxu1 }
 0x14d   :  { %v2763_v50 = vmax.f32 %v1917_v45, 0.0  ;;  %v1928_v51 = vpop.f32.mrb[11].mxu0  ;;  %v1930_v52 = vpop.f32.mrb[11].mxu1  ;;  %v2762_v55 = vmax.f32 %v1925_v49, 0.0 }
 0x14e   :  { %v2760_v53 = vmax.f32 %v1928_v51, 0.0  ;;  %v697_v54 = vadd.f32 %v2774_v44, %v2775_v41  ;;  %v2761_v56 = vmax.f32 %v1930_v52, 0.0  ;;  %v745_v57 = vadd.f32 %v2764_v47, %v2765_v46 }
 0x150   :  { %743 = vadd.xlane.f32.xlu1 %v742_v48  ;;  %698 = vadd.xlane.f32.xlu0 %v697_v54  ;;  %v700_v58 = vadd.f32 %v2760_v53, %v2763_v50  ;;  %v748_v34 = vadd.f32 %v2761_v56, %v2762_v55 }
 0x152   :  { %v1947_v59 = vpop.f32.mrb[12].mxu0  ;;  %v1949_v60 = vpop.f32.mrb[12].mxu1 }
 0x153   :  { %v2767_v61 = vmax.f32 %v1947_v59, 0.0  ;;  %v1952_v62 = vpop.f32.mrb[13].mxu0  ;;  %v1954_v63 = vpop.f32.mrb[13].mxu1  ;;  %v2769_v16 = vmax.f32 %v1949_v60, 0.0 }
 0x154   :  { %v2766_v14 = vmax.f32 %v1952_v62, 0.0  ;;  %746 = vadd.xlane.f32.xlu0 %v745_v57  ;;  %701 = vadd.xlane.f32.xlu1 %v700_v58  ;;  %v1957_v15 = vpop.f32.mrb[14].mxu0  ;;  %v2768_v33 = vmax.f32 %v1954_v63, 0.0  ;;  %v1965_v37 = vpop.f32.mrb[14].mxu1 }
 0x155   :  { %v2771_v38 = vmax.f32 %v1957_v15, 0.0  ;;  %v1968_v48 = vpop.f32.mrb[15].mxu0  ;;  %v1970_v54 = vpop.f32.mrb[15].mxu1  ;;  %v2778_v53 = vmax.f32 %v1965_v37, 0.0 }
 0x156   :  { %v2770_v57 = vmax.f32 %v1968_v48, 0.0  ;;  %v703_v58 = vadd.f32 %v2766_v14, %v2767_v61  ;;  %v2777_v56 = vmax.f32 %v1970_v54, 0.0  ;;  %v751_v55 = vadd.f32 %v2768_v33, %v2769_v16 }
 0x158   :  { %749 = vadd.xlane.f32.xlu1 %v748_v34  ;;  %704 = vadd.xlane.f32.xlu0 %v703_v58  ;;  %v706_v50 = vadd.f32 %v2770_v57, %v2771_v38  ;;  %v754_v38 = vadd.f32 %v2777_v56, %v2778_v53 }
 0x15a   :  { %v1987_v47 = vpop.f32.mrb[16].mxu0  ;;  %v1989_v46 = vpop.f32.mrb[16].mxu1 }
 0x15b   :  { %v2783_v34 = vmax.f32 %v1987_v47, 0.0  ;;  %v1992_v58 = vpop.f32.mrb[17].mxu0  ;;  %v1994_v14 = vpop.f32.mrb[17].mxu1  ;;  %v2785_v16 = vmax.f32 %v1989_v46, 0.0 }
 0x15c   :  { %v2782_v61 = vmax.f32 %v1992_v58, 0.0  ;;  %752 = vadd.xlane.f32.xlu0 %v751_v55  ;;  %707 = vadd.xlane.f32.xlu1 %v706_v50  ;;  %v1997_v33 = vpop.f32.mrb[18].mxu0  ;;  %v2784_v57 = vmax.f32 %v1994_v14, 0.0  ;;  %v2005_v36 = vpop.f32.mrb[18].mxu1 }
 0x15d   :  { %v2787_v35 = vmax.f32 %v1997_v33, 0.0  ;;  %v2008_v44 = vpop.f32.mrb[19].mxu0  ;;  %v2010_v41 = vpop.f32.mrb[19].mxu1  ;;  %v2794_v32 = vmax.f32 %v2005_v36, 0.0 }
 0x15e   :  { %v2786_v50 = vmax.f32 %v2008_v44, 0.0  ;;  %v709_v55 = vadd.f32 %v2782_v61, %v2783_v34  ;;  %v2793_v56 = vmax.f32 %v2010_v41, 0.0  ;;  %v757_v53 = vadd.f32 %v2784_v57, %v2785_v16 }
 0x160   :  { %755 = vadd.xlane.f32.xlu1 %v754_v38  ;;  %710 = vadd.xlane.f32.xlu0 %v709_v55  ;;  %v712_v29 = vadd.f32 %v2786_v50, %v2787_v35  ;;  %v760_v35 = vadd.f32 %v2793_v56, %v2794_v32 }
 0x162   :  { %v2027_v27 = vpop.f32.mrb[20].mxu0  ;;  %v2029_v26 = vpop.f32.mrb[20].mxu1 }
 0x163   :  { %v2799_v38 = vmax.f32 %v2027_v27, 0.0  ;;  %v2032_v55 = vpop.f32.mrb[21].mxu0  ;;  %v2034_v61 = vpop.f32.mrb[21].mxu1  ;;  %v2801_v16 = vmax.f32 %v2029_v26, 0.0 }
 0x164   :  { %v2798_v34 = vmax.f32 %v2032_v55, 0.0  ;;  %758 = vadd.xlane.f32.xlu0 %v757_v53  ;;  %713 = vadd.xlane.f32.xlu1 %v712_v29  ;;  %v2037_v57 = vpop.f32.mrb[22].mxu0  ;;  %v2800_v50 = vmax.f32 %v2034_v61, 0.0  ;;  %v2045_v24 = vpop.f32.mrb[22].mxu1 }
 0x165   :  { %2852 = vst [vmem:[#allocation11_spill] sm:$0xff] %v2037_v57  ;;  %2853 = vst [vmem:[#allocation12_spill] sm:$0xff] %v2045_v24  ;;  %v2803_v21 = vmax.f32 %v2037_v57, 0.0  ;;  %v2048_v18 = vpop.f32.mrb[23].mxu0  ;;  %v2050_v17 = vpop.f32.mrb[23].mxu1  ;;  %v2808_v13 = vmax.f32 %v2045_v24, 0.0 }
 0x166   :  { %2854 = vst [vmem:[#allocation13_spill] sm:$0xff] %v2048_v18  ;;  %2855 = vst [vmem:[#allocation14_spill] sm:$0xff] %v2050_v17  ;;  %v2802_v29 = vmax.f32 %v2048_v18, 0.0  ;;  %v715_v53 = vadd.f32 %v2798_v34, %v2799_v38  ;;  %v2807_v56 = vmax.f32 %v2050_v17, 0.0  ;;  %v763_v32 = vadd.f32 %v2800_v50, %v2801_v16 }
 0x168   :  { %761 = vadd.xlane.f32.xlu1 %v760_v35  ;;  %716 = vadd.xlane.f32.xlu0 %v715_v53  ;;  %v718_v10 = vadd.f32 %v2802_v29, %v2803_v21  ;;  %v766_v21 = vadd.f32 %v2807_v56, %v2808_v13 }
 0x16a   :  { %v2067_v7 = vpop.f32.mrb[24].mxu0  ;;  %v2069_v5 = vpop.f32.mrb[24].mxu1 }
 0x16b   :  { %2856 = vst [vmem:[#allocation15_spill] sm:$0xff] %v2067_v7  ;;  %2857 = vst [vmem:[#allocation16_spill] sm:$0xff] %v2069_v5  ;;  %v2072_v53 = vpop.f32.mrb[25].mxu0  ;;  %v2074_v34 = vpop.f32.mrb[25].mxu1  ;;  %v2866_v13 = vmax.f32 %v2069_v5, 0.0 }
 0x16c   :  { %2858 = vst [vmem:[#allocation17_spill] sm:$0xff] %v2072_v53  ;;  %2859 = vst [vmem:[#allocation18_spill] sm:$0xff] %v2074_v34  ;;  %764 = vadd.xlane.f32.xlu0 %v763_v32  ;;  %719 = vadd.xlane.f32.xlu1 %v718_v10  ;;  %v2077_v50 = vpop.f32.mrb[26].mxu0  ;;  %v2085_v6 = vpop.f32.mrb[26].mxu1  ;;  %v2864_v32 = vmax.f32 %v2067_v7, 0.0  ;;  %v2865_v16 = vmax.f32 %v2072_v53, 0.0 }
 0x16d   :  { %2860 = vst [vmem:[#allocation19_spill] sm:$0xff] %v2077_v50  ;;  %2861 = vst [vmem:[#allocation20_spill] sm:$0xff] %v2085_v6  ;;  %v2088_v35 = vpop.f32.mrb[27].mxu0  ;;  %v2090_v38 = vpop.f32.mrb[27].mxu1  ;;  %v2819_v17 = vmax.f32 %v2085_v6, 0.0  ;;  %v2867_v2 = vmax.f32 %v2074_v34, 0.0 }
 0x16e   :  { %2862 = vst [vmem:[#allocation21_spill] sm:$0xff] %v2088_v35  ;;  %2863 = vst [vmem:[#allocation22_spill] sm:$0xff] %v2090_v38  ;;  %v2814_v10 = vmax.f32 %v2088_v35, 0.0  ;;  %v721_v29 = vadd.f32 %v2865_v16, %v2864_v32  ;;  %v2818_v56 = vmax.f32 %v2090_v38, 0.0  ;;  %v2868_v18 = vmax.f32 %v2077_v50, 0.0 }
 0x16f   :  { %v769_v24 = vadd.f32 %v2867_v2, %v2866_v13 }
 0x170   :  { %767 = vadd.xlane.f32.xlu1 %v766_v21  ;;  %722 = vadd.xlane.f32.xlu0 %v721_v29  ;;  %v724_v57 = vadd.f32 %v2814_v10, %v2868_v18  ;;  %v772_v10 = vadd.f32 %v2818_v56, %v2819_v17 }
 0x172   :  { %v2107_v7 = vpop.f32.mrb[28].mxu0  ;;  %v2109_v53 = vpop.f32.mrb[28].mxu1 }
 0x173   :  { %2869 = vst [vmem:[#allocation23_spill] sm:$0xff] %v2109_v53  ;;  %v2112_v16 = vpop.f32.mrb[29].mxu0  ;;  %v2114_v29 = vpop.f32.mrb[29].mxu1  ;;  %v2873_v17 = vmax.f32 %v2109_v53, 0.0 }
 0x174   :  { %770 = vadd.xlane.f32.xlu0 %v769_v24  ;;  %725 = vadd.xlane.f32.xlu1 %v724_v57  ;;  %v2117_v2 = vpop.f32.mrb[30].mxu0  ;;  %v2125_v21 = vpop.f32.mrb[30].mxu1  ;;  %v2871_v57 = vmax.f32 %v2107_v7, 0.0  ;;  %v2872_v13 = vmax.f32 %v2112_v16, 0.0  ;;  %v2874_v35 = vmax.f32 %v2114_v29, 0.0 }
 0x175   :  { %v2128_v50 = vpop.f32.mrb[31].mxu0  ;;  %v2130_v32 = vpop.f32.mrb[31].mxu1  ;;  %v2827_v38 = vmax.f32 %v2125_v21, 0.0  ;;  %v2875_v34 = vmax.f32 %v2117_v2, 0.0 }
 0x176   :  { %2870 = vst [vmem:[#allocation24_spill] sm:$0xff] %v2128_v50  ;;  %v2825_v24 = vmax.f32 %v2128_v50, 0.0  ;;  %v727_v18 = vadd.f32 %v2872_v13, %v2871_v57  ;;  %v2826_v56 = vmax.f32 %v2130_v32, 0.0  ;;  %v775_v6 = vadd.f32 %v2874_v35, %v2873_v17 }
 0x177   :  { %v2876_v57 = vmax.f32 %v1831_v0, 0.0  ;;  %v2878_v17 = vmax.f32 %v1836_v3, 0.0  ;;  %v2881_v0 = vmax.f32 %v1838_v4, 0.0 }
 0x178   :  { %773 = vadd.xlane.f32.xlu1 %v772_v10  ;;  %728 = vadd.xlane.f32.xlu0 %v727_v18  ;;  %v730_v5 = vadd.f32 %v2825_v24, %v2875_v34  ;;  %v778_v10 = vadd.f32 %v2826_v56, %v2827_v38 }
 0x17c   :  { %776 = vadd.xlane.f32.xlu0 %v775_v6  ;;  %731 = vadd.xlane.f32.xlu1 %v730_v5 }
 0x180   :  { %779 = vadd.xlane.f32.xlu1 %v778_v10 }
 0x1cd   :  { %v687_v13 = vpop.xlane.xlu0 %686 }
 0x1ce   :  { %v782_v18 = vmul.f32 0.00390625, %v687_v13  ;;  %v2880_v13 = vmax.f32 %v1833_v1, 0.0 }
 0x1cf   :  { %v738_v50 = vpop.xlane.xlu1 %737 }
 0x1d0   :  { %v2153_v53 = vsub.f32 %v2876_v57, %v782_v18  ;;  %v2157_v35 = vsub.f32 %v2878_v17, %v782_v18  ;;  %v799_v24 = vmul.f32 0.00390625, %v738_v50 }
 0x1d1   :  { %v735_v34 = vpop.xlane.xlu0 %734 }
 0x1d2   :  { %2877 = vst [vmem:[#allocation25_spill] sm:$0xff] %v2153_v53  ;;  %2879 = vst [vmem:[#allocation26_spill] sm:$0xff] %v2157_v35  ;;  %v798_v6 = vmul.f32 0.00390625, %v735_v34  ;;  %v878_v5 = vmul.f32 %v2153_v53, %v2153_v53  ;;  %v879_v10 = vmul.f32 %v2157_v35, %v2157_v35  ;;  %v2883_v35 = vmax.f32 %v1845_v9, 0.0 }
 0x1d3   :  { %v2891_v9 = vmax.f32 %v1872_v22, 0.0 }
 0x1d4   :  { %v2165_v56 = vsub.f32 %v2880_v13, %v798_v6  ;;  %v2169_v57 = vsub.f32 %v2881_v0, %v798_v6  ;;  %v942_v17 = vadd.f32 %v879_v10, %v878_v5  ;;  %v2177_v1 = vsub.f32 %v2883_v35, %v799_v24 }
 0x1d5   :  { %v690_v3 = vpop.xlane.xlu0 %689  ;;  %v693_v18 = vpop.xlane.xlu1 %692  ;;  %v2885_v13 = vmax.f32 %v1850_v12, 0.0  ;;  %v2886_v6 = vmax.f32 %v1843_v8, 0.0  ;;  %v2888_v10 = vmax.f32 %v1848_v11, 0.0 }
 0x1d6   :  { %2882 = vst [vmem:[#allocation27_spill] sm:$0xff] %v2169_v57  ;;  %v783_v38 = vmul.f32 0.00390625, %v690_v3  ;;  %v784_v34 = vmul.f32 0.00390625, %v693_v18  ;;  %v910_v53 = vmul.f32 %v2165_v56, %v2165_v56  ;;  %v911_v50 = vmul.f32 %v2169_v57, %v2169_v57  ;;  %2884 = vst [vmem:[#allocation28_spill] sm:$0xff] %v2177_v1  ;;  %943 = vadd.xlane.f32.xlu0 %v942_v17 }
 0x1d7   :  { %v2181_v4 = vsub.f32 %v2885_v13, %v799_v24  ;;  %v2890_v3 = vmax.f32 %v1867_v19, 0.0 }
 0x1d8   :  { %v2185_v5 = vsub.f32 %v2886_v6, %v783_v38  ;;  %v2189_v0 = vsub.f32 %v2888_v10, %v783_v38  ;;  %v2197_v35 = vsub.f32 %v2891_v9, %v784_v34  ;;  %v990_v13 = vadd.f32 %v911_v50, %v910_v53 }
 0x1d9   :  { %v2193_v18 = vsub.f32 %v2890_v3, %v784_v34  ;;  %v741_v12 = vpop.xlane.xlu0 %740  ;;  %v696_v24 = vpop.xlane.xlu1 %695  ;;  %v912_v38 = vmul.f32 %v2177_v1, %v2177_v1  ;;  %v2892_v53 = vmax.f32 %v1869_v20, 0.0  ;;  %v2893_v50 = vmax.f32 %v1874_v23, 0.0 }
 0x1da   :  { %2887 = vst [vmem:[#allocation29_spill] sm:$0xff] %v2185_v5  ;;  %2889 = vst [vmem:[#allocation30_spill] sm:$0xff] %v2189_v0  ;;  %v800_v17 = vmul.f32 0.00390625, %v741_v12  ;;  %v785_v57 = vmul.f32 0.00390625, %v696_v24  ;;  %v883_v11 = vmul.f32 %v2197_v35, %v2197_v35  ;;  %991 = vadd.xlane.f32.xlu0 %v990_v13  ;;  %v880_v19 = vmul.f32 %v2185_v5, %v2185_v5 }
 0x1db   :  { %v882_v8 = vmul.f32 %v2193_v18, %v2193_v18  ;;  %v881_v22 = vmul.f32 %v2189_v0, %v2189_v0  ;;  %v2894_v10 = vmax.f32 %v1877_v25, 0.0  ;;  %v913_v9 = vmul.f32 %v2181_v4, %v2181_v4 }
 0x1dc   :  { %v2211_v34 = vsub.f32 %v2892_v53, %v800_v17  ;;  %v2215_v6 = vsub.f32 %v2893_v50, %v800_v17  ;;  %v2895_v12 = vmax.f32 %v1884_v30, 0.0  ;;  %v2896_v17 = vmax.f32 %v1907_v39, 0.0 }
 0x1dd   :  { %v2219_v3 = vsub.f32 %v2894_v10, %v785_v57  ;;  %v744_v13 = vpop.xlane.xlu1 %743  ;;  %v699_v1 = vpop.xlane.xlu0 %698  ;;  %v948_v20 = vadd.f32 %v883_v11, %v882_v8  ;;  %v945_v53 = vadd.f32 %v881_v22, %v880_v19  ;;  %v2897_v30 = vmax.f32 %v1912_v42, 0.0 }
 0x1de   :  { %v2225_v24 = vsub.f32 %v2895_v12, %v785_v57  ;;  %v801_v0 = vmul.f32 0.00390625, %v744_v13  ;;  %v786_v5 = vmul.f32 0.00390625, %v699_v1  ;;  %v914_v23 = vmul.f32 %v2211_v34, %v2211_v34 }
 0x1df   :  { %v915_v25 = vmul.f32 %v2215_v6, %v2215_v6  ;;  %949 = vadd.xlane.f32.xlu0 %v948_v20  ;;  %946 = vadd.xlane.f32.xlu1 %v945_v53  ;;  %v993_v8 = vadd.f32 %v913_v9, %v912_v38  ;;  %v884_v1 = vmul.f32 %v2219_v3, %v2219_v3  ;;  %v2898_v11 = vmax.f32 %v1881_v28, 0.0 }
 0x1e0   :  { %v2233_v50 = vsub.f32 %v2896_v17, %v786_v5  ;;  %v2237_v57 = vsub.f32 %v2897_v30, %v786_v5  ;;  %v2899_v22 = vmax.f32 %v1886_v31, 0.0  ;;  %v885_v42 = vmul.f32 %v2225_v24, %v2225_v24 }
 0x1e1   :  { %v2243_v19 = vsub.f32 %v2898_v11, %v801_v0  ;;  %v747_v12 = vpop.xlane.xlu0 %746  ;;  %v702_v39 = vpop.xlane.xlu1 %701  ;;  %v996_v13 = vadd.f32 %v915_v25, %v914_v23  ;;  %v2900_v31 = vmax.f32 %v1909_v40, 0.0  ;;  %v2901_v9 = vmax.f32 %v1914_v43, 0.0 }
 0x1e2   :  { %v2247_v10 = vsub.f32 %v2899_v22, %v801_v0  ;;  %v802_v5 = vmul.f32 0.00390625, %v747_v12  ;;  %v787_v20 = vmul.f32 0.00390625, %v702_v39  ;;  %v886_v38 = vmul.f32 %v2233_v50, %v2233_v50 }
 0x1e3   :  { %v887_v28 = vmul.f32 %v2237_v57, %v2237_v57  ;;  %997 = vadd.xlane.f32.xlu0 %v996_v13  ;;  %994 = vadd.xlane.f32.xlu1 %v993_v8  ;;  %v2902_v23 = vmax.f32 %v1917_v45, 0.0  ;;  %v2903_v17 = vmax.f32 %v1928_v51, 0.0  ;;  %v951_v8 = vadd.f32 %v885_v42, %v884_v1 }
 0x1e4   :  { %v2257_v0 = vsub.f32 %v2900_v31, %v802_v5  ;;  %v2261_v53 = vsub.f32 %v2901_v9, %v802_v5  ;;  %v916_v40 = vmul.f32 %v2243_v19, %v2243_v19  ;;  %v917_v43 = vmul.f32 %v2247_v10, %v2247_v10 }
 0x1e5   :  { %v2265_v25 = vsub.f32 %v2902_v23, %v787_v20  ;;  %v2269_v30 = vsub.f32 %v2903_v17, %v787_v20  ;;  %v750_v11 = vpop.xlane.xlu1 %749  ;;  %v705_v22 = vpop.xlane.xlu0 %704  ;;  %v954_v12 = vadd.f32 %v887_v28, %v886_v38  ;;  %v2904_v1 = vmax.f32 %v1925_v49, 0.0 }
 0x1e6   :  { %v803_v39 = vmul.f32 0.00390625, %v750_v11  ;;  %v788_v13 = vmul.f32 0.00390625, %v705_v22  ;;  %v918_v45 = vmul.f32 %v2257_v0, %v2257_v0  ;;  %v919_v51 = vmul.f32 %v2261_v53, %v2261_v53 }
 0x1e7   :  { %955 = vadd.xlane.f32.xlu0 %v954_v12  ;;  %952 = vadd.xlane.f32.xlu1 %v951_v8  ;;  %v888_v5 = vmul.f32 %v2265_v25, %v2265_v25  ;;  %v2905_v20 = vmax.f32 %v1947_v59, 0.0  ;;  %v2906_v28 = vmax.f32 %v1952_v62, 0.0  ;;  %v889_v9 = vmul.f32 %v2269_v30, %v2269_v30 }
 0x1e8   :  { %v2283_v42 = vsub.f32 %v2904_v1, %v803_v39  ;;  %v2907_v23 = vmax.f32 %v1930_v52, 0.0  ;;  %v1002_v49 = vadd.f32 %v919_v51, %v918_v45  ;;  %v999_v12 = vadd.f32 %v917_v43, %v916_v40 }
 0x1e9   :  { %v2287_v38 = vsub.f32 %v2905_v20, %v788_v13  ;;  %v2291_v31 = vsub.f32 %v2906_v28, %v788_v13  ;;  %v753_v11 = vpop.xlane.xlu0 %752  ;;  %v708_v22 = vpop.xlane.xlu1 %707  ;;  %v2908_v13 = vmax.f32 %v1949_v60, 0.0  ;;  %v2909_v52 = vmax.f32 %v1954_v63, 0.0 }
 0x1ea   :  { %v2297_v17 = vsub.f32 %v2907_v23, %v803_v39  ;;  %v804_v8 = vmul.f32 0.00390625, %v753_v11  ;;  %v789_v1 = vmul.f32 0.00390625, %v708_v22  ;;  %v957_v45 = vadd.f32 %v889_v9, %v888_v5 }
 0x1eb   :  { %v890_v59 = vmul.f32 %v2287_v38, %v2287_v38  ;;  %v891_v62 = vmul.f32 %v2291_v31, %v2291_v31  ;;  %1003 = vadd.xlane.f32.xlu0 %v1002_v49  ;;  %1000 = vadd.xlane.f32.xlu1 %v999_v12  ;;  %v920_v40 = vmul.f32 %v2283_v42, %v2283_v42  ;;  %v2910_v43 = vmax.f32 %v1957_v15, 0.0 }
 0x1ec   :  { %v2305_v20 = vsub.f32 %v2908_v13, %v804_v8  ;;  %v2309_v39 = vsub.f32 %v2909_v52, %v804_v8  ;;  %v2911_v28 = vmax.f32 %v1968_v48, 0.0  ;;  %v921_v63 = vmul.f32 %v2297_v17, %v2297_v17 }
 0x1ed   :  { %v2315_v51 = vsub.f32 %v2910_v43, %v789_v1  ;;  %v756_v11 = vpop.xlane.xlu1 %755  ;;  %v711_v60 = vpop.xlane.xlu0 %710  ;;  %v960_v22 = vadd.f32 %v891_v62, %v890_v59  ;;  %v2912_v48 = vmax.f32 %v1965_v37, 0.0  ;;  %v2913_v8 = vmax.f32 %v1970_v54, 0.0 }
 0x1ee   :  { %v2319_v23 = vsub.f32 %v2911_v28, %v789_v1  ;;  %v805_v49 = vmul.f32 0.00390625, %v756_v11  ;;  %v790_v12 = vmul.f32 0.00390625, %v711_v60  ;;  %v922_v5 = vmul.f32 %v2305_v20, %v2305_v20 }
 0x1ef   :  { %v923_v15 = vmul.f32 %v2309_v39, %v2309_v39  ;;  %961 = vadd.xlane.f32.xlu0 %v960_v22  ;;  %958 = vadd.xlane.f32.xlu1 %v957_v45  ;;  %v2914_v59 = vmax.f32 %v1987_v47, 0.0  ;;  %v2915_v13 = vmax.f32 %v1992_v58, 0.0  ;;  %v1005_v45 = vadd.f32 %v921_v63, %v920_v40 }
 0x1f0   :  { %v2329_v9 = vsub.f32 %v2912_v48, %v805_v49  ;;  %v2333_v1 = vsub.f32 %v2913_v8, %v805_v49  ;;  %v892_v37 = vmul.f32 %v2315_v51, %v2315_v51  ;;  %v893_v54 = vmul.f32 %v2319_v23, %v2319_v23 }
 0x1f1   :  { %v2337_v62 = vsub.f32 %v2914_v59, %v790_v12  ;;  %v2341_v52 = vsub.f32 %v2915_v13, %v790_v12  ;;  %v759_v43 = vpop.xlane.xlu0 %758  ;;  %v714_v28 = vpop.xlane.xlu1 %713  ;;  %v1008_v11 = vadd.f32 %v923_v15, %v922_v5  ;;  %v2916_v40 = vmax.f32 %v1989_v46, 0.0 }
 0x1f2   :  { %v806_v60 = vmul.f32 0.00390625, %v759_v43  ;;  %v791_v22 = vmul.f32 0.00390625, %v714_v28  ;;  %v924_v49 = vmul.f32 %v2329_v9, %v2329_v9  ;;  %v2917_v12 = vmax.f32 %v1994_v14, 0.0 }
 0x1f3   :  { %v894_v47 = vmul.f32 %v2337_v62, %v2337_v62  ;;  %v895_v58 = vmul.f32 %v2341_v52, %v2341_v52  ;;  %1009 = vadd.xlane.f32.xlu0 %v1008_v11  ;;  %1006 = vadd.xlane.f32.xlu1 %v1005_v45  ;;  %v2918_v15 = vmax.f32 %v1997_v33, 0.0  ;;  %v925_v8 = vmul.f32 %v2333_v1, %v2333_v1 }
 0x1f4   :  { %v2355_v63 = vsub.f32 %v2916_v40, %v806_v60  ;;  %v2359_v5 = vsub.f32 %v2917_v12, %v806_v60  ;;  %v2919_v59 = vmax.f32 %v2008_v44, 0.0  ;;  %v963_v11 = vadd.f32 %v893_v54, %v892_v37 }
 0x1f5   :  { %v2363_v48 = vsub.f32 %v2918_v15, %v791_v22  ;;  %v762_v43 = vpop.xlane.xlu1 %761  ;;  %v717_v28 = vpop.xlane.xlu0 %716  ;;  %v966_v46 = vadd.f32 %v895_v58, %v894_v47  ;;  %v2921_v60 = vmax.f32 %v2027_v27, 0.0  ;;  %v2922_v44 = vmax.f32 %v2032_v55, 0.0 }
 0x1f6   :  { %v2369_v13 = vsub.f32 %v2919_v59, %v791_v22  ;;  %v807_v45 = vmul.f32 0.00390625, %v762_v43  ;;  %v792_v40 = vmul.f32 0.00390625, %v717_v28  ;;  %v926_v14 = vmul.f32 %v2355_v63, %v2355_v63 }
 0x1f7   :  { %v927_v33 = vmul.f32 %v2359_v5, %v2359_v5  ;;  %967 = vadd.xlane.f32.xlu0 %v966_v46  ;;  %964 = vadd.xlane.f32.xlu1 %v963_v11  ;;  %v1011_v47 = vadd.f32 %v925_v8, %v924_v49  ;;  %v896_v37 = vmul.f32 %v2363_v48, %v2363_v48  ;;  %v2923_v54 = vmax.f32 %v2005_v36, 0.0 }
 0x1f8   :  { %2920 = vst [vmem:[#allocation31_spill] sm:$0xff] %v2369_v13  ;;  %v2377_v12 = vsub.f32 %v2921_v60, %v792_v40  ;;  %v2381_v22 = vsub.f32 %v2922_v44, %v792_v40  ;;  %v2925_v15 = vmax.f32 %v2010_v41, 0.0  ;;  %v897_v55 = vmul.f32 %v2369_v13, %v2369_v13  ;;  %v2934_v44 = vld [vmem:[#allocation13_spill] sm:$0xff] }
 0x1f9   :  { %v2387_v58 = vsub.f32 %v2923_v54, %v807_v45  ;;  %v765_v43 = vpop.xlane.xlu0 %764  ;;  %v720_v27 = vpop.xlane.xlu1 %719  ;;  %v1014_v28 = vadd.f32 %v927_v33, %v926_v14  ;;  %v2927_v41 = vmax.f32 %v2029_v26, 0.0  ;;  %v2931_v14 = vld [vmem:[#allocation11_spill] sm:$0xff]  ;;  %v2935_v54 = vmax.f32 %v2934_v44, 0.0 }
 0x1fa   :  { %v2391_v59 = vsub.f32 %v2925_v15, %v807_v45  ;;  %v808_v46 = vmul.f32 0.00390625, %v765_v43  ;;  %v793_v11 = vmul.f32 0.00390625, %v720_v27  ;;  %v898_v49 = vmul.f32 %v2377_v12, %v2377_v12 }
 0x1fb   :  { %2924 = vst [vmem:[#allocation32_spill] sm:$0xff] %v2387_v58  ;;  %v899_v36 = vmul.f32 %v2381_v22, %v2381_v22  ;;  %1015 = vadd.xlane.f32.xlu0 %v1014_v28  ;;  %1012 = vadd.xlane.f32.xlu1 %v1011_v47  ;;  %v2929_v45 = vmax.f32 %v2034_v61, 0.0  ;;  %v2932_v33 = vmax.f32 %v2931_v14, 0.0  ;;  %v969_v47 = vadd.f32 %v897_v55, %v896_v37  ;;  %v2937_v37 = vld [vmem:[#allocation12_spill] sm:$0xff] }
 0x1fc   :  { %2926 = vst [vmem:[#allocation33_spill] sm:$0xff] %v2391_v59  ;;  %v2401_v8 = vsub.f32 %v2927_v41, %v808_v46  ;;  %v2413_v15 = vsub.f32 %v2935_v54, %v793_v11  ;;  %v928_v26 = vmul.f32 %v2387_v58, %v2387_v58  ;;  %v929_v61 = vmul.f32 %v2391_v59, %v2391_v59  ;;  %v2942_v54 = vld [vmem:[#allocation17_spill] sm:$0xff] }
 0x1fd   :  { %v2405_v40 = vsub.f32 %v2929_v45, %v808_v46  ;;  %v2409_v60 = vsub.f32 %v2932_v33, %v793_v11  ;;  %v768_v43 = vpop.xlane.xlu1 %767  ;;  %v723_v27 = vpop.xlane.xlu0 %722  ;;  %v972_v28 = vadd.f32 %v899_v36, %v898_v49  ;;  %v2938_v55 = vmax.f32 %v2937_v37, 0.0  ;;  %v2940_v36 = vld [vmem:[#allocation15_spill] sm:$0xff] }
 0x1fe   :  { %2928 = vst [vmem:[#allocation34_spill] sm:$0xff] %v2401_v8  ;;  %2936 = vst [vmem:[#allocation13_spill] sm:$0xff] %v2413_v15  ;;  %v809_v46 = vmul.f32 0.00390625, %v768_v43  ;;  %v794_v41 = vmul.f32 0.00390625, %v723_v27  ;;  %v930_v45 = vmul.f32 %v2401_v8, %v2401_v8  ;;  %v2941_v33 = vmax.f32 %v2940_v36, 0.0 }
 0x1ff   :  { %2930 = vst [vmem:[#allocation35_spill] sm:$0xff] %v2405_v40  ;;  %2933 = vst [vmem:[#allocation11_spill] sm:$0xff] %v2409_v60  ;;  %v931_v14 = vmul.f32 %v2405_v40, %v2405_v40  ;;  %973 = vadd.xlane.f32.xlu0 %v972_v28  ;;  %970 = vadd.xlane.f32.xlu1 %v969_v47  ;;  %v900_v11 = vmul.f32 %v2409_v60, %v2409_v60  ;;  %v2943_v43 = vmax.f32 %v2942_v54, 0.0  ;;  %v2944_v28 = vld [vmem:[#allocation14_spill] sm:$0xff] }
 0x200   :  { %v2427_v49 = vsub.f32 %v2938_v55, %v809_v46  ;;  %v2431_v44 = vsub.f32 %v2941_v33, %v794_v41  ;;  %v901_v59 = vmul.f32 %v2413_v15, %v2413_v15  ;;  %v2945_v47 = vmax.f32 %v2944_v28, 0.0  ;;  %v2947_v33 = vld [vmem:[#allocation16_spill] sm:$0xff] }
 0x201   :  { %v2435_v27 = vsub.f32 %v2943_v43, %v794_v41  ;;  %v771_v60 = vpop.xlane.xlu0 %770  ;;  %v726_v40 = vpop.xlane.xlu1 %725  ;;  %v1020_v37 = vadd.f32 %v931_v14, %v930_v45  ;;  %v1017_v55 = vadd.f32 %v929_v61, %v928_v26  ;;  %v2948_v54 = vmax.f32 %v2947_v33, 0.0  ;;  %v2954_v14 = vld [vmem:[#allocation21_spill] sm:$0xff] }
 0x202   :  { %2939 = vst [vmem:[#allocation12_spill] sm:$0xff] %v2427_v49  ;;  %v2441_v58 = vsub.f32 %v2945_v47, %v809_v46  ;;  %v810_v8 = vmul.f32 0.00390625, %v771_v60  ;;  %v795_v13 = vmul.f32 0.00390625, %v726_v40  ;;  %v902_v36 = vmul.f32 %v2431_v44, %v2431_v44  ;;  %v2949_v46 = vld [vmem:[#allocation18_spill] sm:$0xff]  ;;  %v2952_v60 = vld [vmem:[#allocation19_spill] sm:$0xff] }
 0x203   :  { %v903_v41 = vmul.f32 %v2435_v27, %v2435_v27  ;;  %1021 = vadd.xlane.f32.xlu0 %v1020_v37  ;;  %1018 = vadd.xlane.f32.xlu1 %v1017_v55  ;;  %v2950_v28 = vmax.f32 %v2949_v46, 0.0  ;;  %v975_v45 = vadd.f32 %v901_v59, %v900_v11  ;;  %v932_v40 = vmul.f32 %v2427_v49, %v2427_v49 }
 0x204   :  { %2946 = vst [vmem:[#allocation15_spill] sm:$0xff] %v2441_v58  ;;  %v2449_v43 = vsub.f32 %v2948_v54, %v810_v8  ;;  %v2953_v26 = vmax.f32 %v2952_v60, 0.0  ;;  %v2955_v15 = vmax.f32 %v2954_v14, 0.0  ;;  %v933_v46 = vmul.f32 %v2441_v58, %v2441_v58  ;;  %v2957_v60 = vld [vmem:[#allocation20_spill] sm:$0xff] }
 0x205   :  { %v2453_v47 = vsub.f32 %v2950_v28, %v810_v8  ;;  %v774_v55 = vpop.xlane.xlu1 %773  ;;  %v729_v33 = vpop.xlane.xlu0 %728  ;;  %v978_v54 = vadd.f32 %v903_v41, %v902_v36  ;;  %v2963_v41 = vmax.f32 %v2107_v7, 0.0 }
 0x206   :  { %v2459_v61 = vsub.f32 %v2953_v26, %v795_v13  ;;  %v2463_v37 = vsub.f32 %v2955_v15, %v795_v13  ;;  %v811_v8 = vmul.f32 0.00390625, %v774_v55  ;;  %v796_v28 = vmul.f32 0.00390625, %v729_v33  ;;  %v2960_v15 = vld [vmem:[#allocation22_spill] sm:$0xff] }
 0x207   :  { %2951 = vst [vmem:[#allocation17_spill] sm:$0xff] %v2453_v47  ;;  %v934_v59 = vmul.f32 %v2449_v43, %v2449_v43  ;;  %v935_v11 = vmul.f32 %v2453_v47, %v2453_v47  ;;  %979 = vadd.xlane.f32.xlu0 %v978_v54  ;;  %976 = vadd.xlane.f32.xlu1 %v975_v45  ;;  %v2958_v26 = vmax.f32 %v2957_v60, 0.0  ;;  %v2961_v14 = vmax.f32 %v2960_v15, 0.0 }
 0x208   :  { %2956 = vst [vmem:[#allocation14_spill] sm:$0xff] %v2463_v37  ;;  %v2481_v55 = vsub.f32 %v2963_v41, %v796_v28  ;;  %v2964_v33 = vmax.f32 %v2112_v16, 0.0  ;;  %v1023_v45 = vadd.f32 %v933_v46, %v932_v40  ;;  %v904_v60 = vmul.f32 %v2459_v61, %v2459_v61 }
 0x209   :  { %v2473_v13 = vsub.f32 %v2958_v26, %v811_v8  ;;  %v2477_v36 = vsub.f32 %v2961_v14, %v811_v8  ;;  %v777_v49 = vpop.xlane.xlu0 %776  ;;  %v732_v47 = vpop.xlane.xlu1 %731  ;;  %v1026_v54 = vadd.f32 %v935_v11, %v934_v59  ;;  %v905_v26 = vmul.f32 %v2463_v37, %v2463_v37 }
 0x20a   :  { %v2485_v58 = vsub.f32 %v2964_v33, %v796_v28  ;;  %v812_v8 = vmul.f32 0.00390625, %v777_v49  ;;  %v797_v15 = vmul.f32 0.00390625, %v732_v47  ;;  %v906_v7 = vmul.f32 %v2481_v55, %v2481_v55  ;;  %v2965_v28 = vld [vmem:[#allocation23_spill] sm:$0xff]  ;;  %v2971_v33 = vld [vmem:[#allocation24_spill] sm:$0xff] }
 0x20b   :  { %2959 = vst [vmem:[#allocation16_spill] sm:$0xff] %v2473_v13  ;;  %2962 = vst [vmem:[#allocation18_spill] sm:$0xff] %v2477_v36  ;;  %1027 = vadd.xlane.f32.xlu0 %v1026_v54  ;;  %1024 = vadd.xlane.f32.xlu1 %v1023_v45  ;;  %v2966_v14 = vmax.f32 %v2965_v28, 0.0  ;;  %v2967_v40 = vmax.f32 %v2114_v29, 0.0  ;;  %v936_v49 = vmul.f32 %v2473_v13, %v2473_v13  ;;  %v2969_v11 = vmax.f32 %v2117_v2, 0.0 }
 0x20c   :  { %v907_v16 = vmul.f32 %v2485_v58, %v2485_v58  ;;  %v937_v47 = vmul.f32 %v2477_v36, %v2477_v36  ;;  %v2972_v54 = vmax.f32 %v2971_v33, 0.0  ;;  %v981_v37 = vadd.f32 %v905_v26, %v904_v60 }
 0x20d   :  { %v2497_v59 = vsub.f32 %v2966_v14, %v812_v8  ;;  %v2501_v46 = vsub.f32 %v2967_v40, %v812_v8  ;;  %v2509_v41 = vsub.f32 %v2969_v11, %v797_v15  ;;  %v780_v28 = vpop.xlane.xlu1 %779  ;;  %v2974_v11 = vmax.f32 %v2125_v21, 0.0 }
 0x20e   :  { %v2513_v45 = vsub.f32 %v2972_v54, %v797_v15  ;;  %v984_v14 = vadd.f32 %v907_v16, %v906_v7  ;;  %v813_v29 = vmul.f32 0.00390625, %v780_v28  ;;  %v1029_v2 = vadd.f32 %v937_v47, %v936_v49 }
 0x20f   :  { %2968 = vst [vmem:[#allocation19_spill] sm:$0xff] %v2501_v46  ;;  %2970 = vst [vmem:[#allocation21_spill] sm:$0xff] %v2509_v41  ;;  %v938_v8 = vmul.f32 %v2497_v59, %v2497_v59  ;;  %v939_v40 = vmul.f32 %v2501_v46, %v2501_v46  ;;  %982 = vadd.xlane.f32.xlu1 %v981_v37  ;;  %v2976_v15 = vmax.f32 %v2130_v32, 0.0  ;;  %v1199_v32 = vlaneseq }
 0x210   :  { %2973 = vst [vmem:[#allocation20_spill] sm:$0xff] %v2513_v45  ;;  %985 = vadd.xlane.f32.xlu0 %v984_v14  ;;  %v2521_v13 = vsub.f32 %v2974_v11, %v813_v29  ;;  %v908_v60 = vmul.f32 %v2509_v41, %v2509_v41  ;;  %v909_v26 = vmul.f32 %v2513_v45, %v2513_v45 }
 0x211   :  { %v1032_v36 = vadd.f32 %v939_v40, %v938_v8  ;;  %v2525_v33 = vsub.f32 %v2976_v15, %v813_v29  ;;  %v1200_v54 = vshrl.u32 %v1199_v32, 7  ;;  %v620_v40 = vld [vmem:[%s2758_s2] sm:$0xf]  ;;  %s1784_s2 = smov [#allocation7]  }
 0x212   :  { %2975 = vst [vmem:[#allocation22_spill] sm:$0xff] %v2521_v13  ;;  %v987_v7 = vadd.f32 %v909_v26, %v908_v60  ;;  %v940_v37 = vmul.f32 %v2521_v13, %v2521_v13  ;;  %s1432_s11 = sshll.u32 %s1784_s2, 4  ;;  %s1433_s11 = int_to_ptr.vmem [resolvable:$true] %s1432_s11 }
 0x213   :  { %2977 = vst [vmem:[#allocation23_spill] sm:$0xff] %v2525_v33  ;;  %1030 = vadd.xlane.f32.xlu1 %v1029_v2  ;;  %v941_v21 = vmul.f32 %v2525_v33, %v2525_v33  ;;  %v1205_v8 = vsub.s32 2, %v1200_v54  ;;  %v1283_v11 = vsub.s32 1, %v1200_v54  ;;  %v1287_v15 = vsub.s32 3, %v1200_v54  ;;  %s1752_s12 = scalar_lea.vmem %s1433_s11, 8192  ;;  %p1757_p3 = scmp.lt.s32.totalorder %s1433_s11, %s1433_s11 }
 0x214   :  { %1033 = vadd.xlane.f32.xlu0 %v1032_v36  ;;  %v1201_v36 = vsub.s32 0, %v1200_v54  ;;  %p1753_p2 = scmp.ne.s32.totalorder %s1433_s11, %s1752_s12  ;;  %p1758_p4 = scmp.lt.s32.totalorder %s1752_s12, %s1752_s12 }
 0x215   :  { %v1035_v16 = vadd.f32 %v941_v21, %v940_v37 }
 0x216   :  { %v1202_v21 = vrot.slane %v620_v40, %v1201_v36  ;;  %p1759_p5 = por %p1758_p4, %p1757_p3 }
 0x217   :  { %988 = vadd.xlane.f32.xlu1 %v987_v7 }
 0x218   :  { %v2538_v41 = vrot.slane %v1202_v21, %v1201_v36  ;;  %p1760_p6 = pnand %p1759_p5, %p1753_p2 }
 0x21b   :  { %1036 = vadd.xlane.f32.xlu1 %v1035_v16  ;;  %v1206_v16 = vrot.slane %v620_v40, %v1205_v8 }
 0x263   :  { %v944_v49 = vpop.xlane.xlu0 %943 }
 0x264   :  { %v1038_v47 = vmul.f32 0.00390625, %v944_v49 }
 0x266   :  { %v1070_v28 = vadd.f32 1e-05, %v1038_v47  ;;  %v1284_v47 = vrot.slane %v620_v40, %v1283_v11 }
 0x267   :  { %v992_v14 = vpop.xlane.xlu0 %991 }
 0x268   :  { %1644 = vrsqrt.f32 %v1070_v28  ;;  %v1054_v29 = vmul.f32 0.00390625, %v992_v14  ;;  %v1288_v28 = vrot.slane %v620_v40, %v1287_v15  ;;  %v2979_v40 = vld [vmem:[#allocation26_spill] sm:$0xff] }
 0x26a   :  { %v1086_v2 = vadd.f32 1e-05, %v1054_v29  ;;  %v2540_v29 = vrot.slane %v1206_v16, %v1201_v36  ;;  %v2544_v8 = vrot.slane %v1288_v28, %v1283_v11 }
 0x26c   :  { %v950_v60 = vpop.xlane.xlu0 %949  ;;  %v947_v26 = vpop.xlane.xlu1 %946  ;;  %1646 = vrsqrt.f32 %v1086_v2 }
 0x26d   :  { %v1040_v7 = vmul.f32 0.00390625, %v950_v60  ;;  %v1039_v37 = vmul.f32 0.00390625, %v947_v26  ;;  %v2542_v26 = vrot.slane %v1284_v47, %v1283_v11 }
 0x26f   :  { %v1072_v32 = vadd.f32 1e-05, %v1040_v7  ;;  %v1071_v49 = vadd.f32 1e-05, %v1039_v37  ;;  %v2978_v7 = vld [vmem:[#allocation25_spill] sm:$0xff] }
 0x270   :  { %v998_v14 = vpop.xlane.xlu0 %997  ;;  %v995_v33 = vpop.xlane.xlu1 %994 }
 0x271   :  { %1648 = vrsqrt.f32 %v1072_v32  ;;  %v1056_v13 = vmul.f32 0.00390625, %v998_v14  ;;  %v1055_v45 = vmul.f32 0.00390625, %v995_v33  ;;  %v2980_v14 = vld [vmem:[#allocation27_spill] sm:$0xff] }
 0x272   :  { %1650 = vrsqrt.f32 %v1071_v49  ;;  %v1645_v54 = vpop.eup %1644 }
 0x273   :  { %v1088_v2 = vadd.f32 1e-05, %v1056_v13  ;;  %v1087_v60 = vadd.f32 1e-05, %v1055_v45  ;;  %v1134_v37 = vmul.f32 %v1645_v54, %v2978_v7  ;;  %v1135_v15 = vmul.f32 %v1645_v54, %v2979_v40 }
 0x274   :  { %v956_v46 = vpop.xlane.xlu0 %955  ;;  %v953_v32 = vpop.xlane.xlu1 %952 }
 0x275   :  { %1652 = vrsqrt.f32 %v1088_v2  ;;  %v1042_v33 = vmul.f32 0.00390625, %v956_v46  ;;  %v1041_v21 = vmul.f32 0.00390625, %v953_v32  ;;  %v1217_v36 = vmul.f32 %v2538_v41, %v1134_v37 }
 0x276   :  { %v1218_v16 = vmul.f32 %v2540_v29, %v1135_v15  ;;  %1654 = vrsqrt.f32 %v1087_v60  ;;  %v1647_v13 = vpop.eup %1646 }
 0x277   :  { %v1074_v45 = vadd.f32 1e-05, %v1042_v33  ;;  %v1073_v49 = vadd.f32 1e-05, %v1041_v21  ;;  %v1299_v11 = vadd.f32 %v2542_v26, %v1217_v36  ;;  %v1166_v28 = vmul.f32 %v1647_v13, %v2165_v56 }
 0x278   :  { %v1300_v47 = vadd.f32 %v2544_v8, %v1218_v16  ;;  %v1167_v54 = vmul.f32 %v1647_v13, %v2980_v14  ;;  %v1004_v7 = vpop.xlane.xlu0 %1003  ;;  %v1001_v2 = vpop.xlane.xlu1 %1000 }
 0x279   :  { %1656 = vrsqrt.f32 %v1074_v45  ;;  %v1058_v46 = vmul.f32 0.00390625, %v1004_v7  ;;  %v1057_v40 = vmul.f32 0.00390625, %v1001_v2  ;;  %1363 = vst [vmem:[#allocation7] sm:$0xff] %v1299_v11  ;;  %v1249_v60 = vmul.f32 %v2538_v41, %v1166_v28  ;;  %v2982_v28 = vld [vmem:[#allocation30_spill] sm:$0xff] }
 0x27a   :  { %1364 = vst [vmem:[#allocation7 + $0x8] sm:$0xff] %v1300_v47  ;;  %v1250_v37 = vmul.f32 %v2540_v29, %v1167_v54  ;;  %1658 = vrsqrt.f32 %v1073_v49  ;;  %v2981_v47 = vld [vmem:[#allocation29_spill] sm:$0xff] }
 0x27b   :  { %v1649_v15 = vpop.eup %1648  ;;  %v1090_v32 = vadd.f32 1e-05, %v1058_v46  ;;  %v1089_v33 = vadd.f32 1e-05, %v1057_v40  ;;  %v1331_v56 = vadd.f32 %v2542_v26, %v1249_v60 }
 0x27c   :  { %v1651_v21 = vpop.eup %1650  ;;  %v1332_v36 = vadd.f32 %v2544_v8, %v1250_v37  ;;  %v1138_v16 = vmul.f32 %v1649_v15, %v2193_v18  ;;  %v1139_v13 = vmul.f32 %v1649_v15, %v2197_v35  ;;  %v962_v45 = vpop.xlane.xlu0 %961 }
 0x27d   :  { %v959_v11 = vpop.xlane.xlu1 %958  ;;  %v1136_v14 = vmul.f32 %v1651_v21, %v2981_v47  ;;  %v1137_v7 = vmul.f32 %v1651_v21, %v2982_v28  ;;  %1660 = vrsqrt.f32 %v1090_v32  ;;  %v1044_v49 = vmul.f32 0.00390625, %v962_v45  ;;  %1395 = vst [vmem:[#allocation7 + $0x100] sm:$0xff] %v1331_v56  ;;  %v2983_v45 = vld [vmem:[#allocation28_spill] sm:$0xff] }
 0x27e   :  { %1396 = vst [vmem:[#allocation7 + $0x108] sm:$0xff] %v1332_v36  ;;  %v1221_v54 = vmul.f32 %v2538_v41, %v1138_v16  ;;  %v1222_v2 = vmul.f32 %v2540_v29, %v1139_v13  ;;  %1662 = vrsqrt.f32 %v1089_v33  ;;  %v1043_v46 = vmul.f32 0.00390625, %v959_v11 }
 0x27f   :  { %v1653_v40 = vpop.eup %1652  ;;  %v1219_v18 = vmul.f32 %v2538_v41, %v1136_v14  ;;  %v1220_v35 = vmul.f32 %v2540_v29, %v1137_v7  ;;  %v1076_v60 = vadd.f32 1e-05, %v1044_v49 }
 0x280   :  { %v1655_v37 = vpop.eup %1654  ;;  %v1303_v15 = vadd.f32 %v2542_v26, %v1221_v54  ;;  %v1304_v32 = vadd.f32 %v2544_v8, %v1222_v2  ;;  %v1170_v21 = vmul.f32 %v1653_v40, %v2211_v34  ;;  %v1171_v56 = vmul.f32 %v1653_v40, %v2215_v6  ;;  %v1010_v36 = vpop.xlane.xlu0 %1009 }
 0x281   :  { %v1007_v16 = vpop.xlane.xlu1 %1006  ;;  %v1301_v33 = vadd.f32 %v2542_v26, %v1219_v18  ;;  %v1302_v13 = vadd.f32 %v2544_v8, %v1220_v35  ;;  %v1168_v11 = vmul.f32 %v1655_v37, %v2983_v45  ;;  %v1169_v47 = vmul.f32 %v1655_v37, %v2181_v4 }
 0x282   :  { %1367 = vst [vmem:[#allocation7 + $0x20] sm:$0xff] %v1303_v15  ;;  %1368 = vst [vmem:[#allocation7 + $0x28] sm:$0xff] %v1304_v32  ;;  %v1253_v14 = vmul.f32 %v2538_v41, %v1170_v21  ;;  %v1254_v28 = vmul.f32 %v2540_v29, %v1171_v56  ;;  %1664 = vrsqrt.f32 %v1076_v60  ;;  %v1075_v34 = vadd.f32 1e-05, %v1043_v46 }
 0x283   :  { %v1657_v7 = vpop.eup %1656  ;;  %1365 = vst [vmem:[#allocation7 + $0x10] sm:$0xff] %v1301_v33  ;;  %1366 = vst [vmem:[#allocation7 + $0x18] sm:$0xff] %v1302_v13  ;;  %v1251_v6 = vmul.f32 %v2538_v41, %v1168_v11  ;;  %v1252_v49 = vmul.f32 %v2540_v29, %v1169_v47  ;;  %v1060_v54 = vmul.f32 0.00390625, %v1010_v36  ;;  %v1059_v2 = vmul.f32 0.00390625, %v1007_v16 }
 0x284   :  { %v1659_v40 = vpop.eup %1658  ;;  %v1335_v4 = vadd.f32 %v2542_v26, %v1253_v14  ;;  %v1336_v18 = vadd.f32 %v2544_v8, %v1254_v28  ;;  %v1142_v35 = vmul.f32 %v1657_v7, %v2233_v50  ;;  %v1143_v37 = vmul.f32 %v1657_v7, %v2237_v57  ;;  %v968_v60 = vpop.xlane.xlu0 %967 }
 0x285   :  { %v965_v46 = vpop.xlane.xlu1 %964  ;;  %v1333_v15 = vadd.f32 %v2542_v26, %v1251_v6  ;;  %v1334_v32 = vadd.f32 %v2544_v8, %v1252_v49  ;;  %v1140_v21 = vmul.f32 %v1659_v40, %v2219_v3  ;;  %v1141_v56 = vmul.f32 %v1659_v40, %v2225_v24 }
 0x286   :  { %1399 = vst [vmem:[#allocation7 + $0x120] sm:$0xff] %v1335_v4  ;;  %1400 = vst [vmem:[#allocation7 + $0x128] sm:$0xff] %v1336_v18  ;;  %v1225_v36 = vmul.f32 %v2538_v41, %v1142_v35  ;;  %v1226_v16 = vmul.f32 %v2540_v29, %v1143_v37  ;;  %1666 = vrsqrt.f32 %v1075_v34  ;;  %v1092_v50 = vadd.f32 1e-05, %v1060_v54 }
 0x287   :  { %v1661_v33 = vpop.eup %1660  ;;  %1397 = vst [vmem:[#allocation7 + $0x110] sm:$0xff] %v1333_v15  ;;  %1398 = vst [vmem:[#allocation7 + $0x118] sm:$0xff] %v1334_v32  ;;  %v1223_v57 = vmul.f32 %v2538_v41, %v1140_v21  ;;  %v1224_v13 = vmul.f32 %v2540_v29, %v1141_v56  ;;  %v1091_v45 = vadd.f32 1e-05, %v1059_v2  ;;  %v1046_v11 = vmul.f32 0.00390625, %v968_v60 }
 0x288   :  { %v1663_v3 = vpop.eup %1662  ;;  %v1307_v24 = vadd.f32 %v2542_v26, %v1225_v36  ;;  %v1308_v47 = vadd.f32 %v2544_v8, %v1226_v16  ;;  %v1174_v14 = vmul.f32 %v1661_v33, %v2257_v0  ;;  %v1175_v28 = vmul.f32 %v1661_v33, %v2261_v53  ;;  %v1016_v34 = vpop.xlane.xlu0 %1015 }
 0x289   :  { %v1013_v7 = vpop.xlane.xlu1 %1012  ;;  %v1305_v6 = vadd.f32 %v2542_v26, %v1223_v57  ;;  %v1306_v49 = vadd.f32 %v2544_v8, %v1224_v13  ;;  %v1172_v54 = vmul.f32 %v1663_v3, %v2243_v19  ;;  %v1173_v2 = vmul.f32 %v1663_v3, %v2247_v10 }
 0x28a   :  { %1371 = vst [vmem:[#allocation7 + $0x40] sm:$0xff] %v1307_v24  ;;  %1372 = vst [vmem:[#allocation7 + $0x48] sm:$0xff] %v1308_v47  ;;  %v1257_v40 = vmul.f32 %v2538_v41, %v1174_v14  ;;  %v1258_v4 = vmul.f32 %v2540_v29, %v1175_v28  ;;  %1668 = vrsqrt.f32 %v1092_v50  ;;  %v1078_v0 = vadd.f32 1e-05, %v1046_v11 }
 0x28b   :  { %1369 = vst [vmem:[#allocation7 + $0x30] sm:$0xff] %v1305_v6  ;;  %1370 = vst [vmem:[#allocation7 + $0x38] sm:$0xff] %v1306_v49  ;;  %v1255_v53 = vmul.f32 %v2538_v41, %v1172_v54  ;;  %v1256_v18 = vmul.f32 %v2540_v29, %v1173_v2  ;;  %1670 = vrsqrt.f32 %v1091_v45  ;;  %v1045_v35 = vmul.f32 0.00390625, %v965_v46 }
 0x28c   :  { %v1665_v37 = vpop.eup %1664  ;;  %v1339_v19 = vadd.f32 %v2542_v26, %v1257_v40  ;;  %v1340_v10 = vadd.f32 %v2544_v8, %v1258_v4  ;;  %1672 = vrsqrt.f32 %v1078_v0  ;;  %v1062_v60 = vmul.f32 0.00390625, %v1016_v34  ;;  %v974_v15 = vpop.xlane.xlu0 %973 }
 0x28d   :  { %v971_v32 = vpop.xlane.xlu1 %970  ;;  %v1337_v21 = vadd.f32 %v2542_v26, %v1255_v53  ;;  %v1338_v56 = vadd.f32 %v2544_v8, %v1256_v18  ;;  %v1146_v36 = vmul.f32 %v1665_v37, %v2287_v38  ;;  %v1147_v16 = vmul.f32 %v1665_v37, %v2291_v31 }
 0x28e   :  { %1403 = vst [vmem:[#allocation7 + $0x140] sm:$0xff] %v1339_v19  ;;  %1404 = vst [vmem:[#allocation7 + $0x148] sm:$0xff] %v1340_v10  ;;  %v1077_v46 = vadd.f32 1e-05, %v1045_v35  ;;  %v1094_v50 = vadd.f32 1e-05, %v1062_v60 }
 0x28f   :  { %v1061_v33 = vmul.f32 0.00390625, %v1013_v7  ;;  %v1048_v57 = vmul.f32 0.00390625, %v974_v15  ;;  %1401 = vst [vmem:[#allocation7 + $0x130] sm:$0xff] %v1337_v21  ;;  %1402 = vst [vmem:[#allocation7 + $0x138] sm:$0xff] %v1338_v56  ;;  %v1229_v13 = vmul.f32 %v2538_v41, %v1146_v36  ;;  %v1230_v45 = vmul.f32 %v2540_v29, %v1147_v16 }
 0x290   :  { %v1047_v11 = vmul.f32 0.00390625, %v971_v32  ;;  %v1667_v3 = vpop.eup %1666  ;;  %1674 = vrsqrt.f32 %v1077_v46  ;;  %v1022_v38 = vpop.xlane.xlu0 %1021 }
 0x291   :  { %v1093_v24 = vadd.f32 1e-05, %v1061_v33  ;;  %v1080_v47 = vadd.f32 1e-05, %v1048_v57  ;;  %v1019_v14 = vpop.xlane.xlu1 %1018  ;;  %v1311_v31 = vadd.f32 %v2542_v26, %v1229_v13  ;;  %v1312_v28 = vadd.f32 %v2544_v8, %v1230_v45 }
 0x292   :  { %v1144_v34 = vmul.f32 %v1667_v3, %v2265_v25  ;;  %v1145_v7 = vmul.f32 %v1667_v3, %v2269_v30  ;;  %1676 = vrsqrt.f32 %v1094_v50  ;;  %v1079_v6 = vadd.f32 1e-05, %v1047_v11 }
 0x293   :  { %v1064_v49 = vmul.f32 0.00390625, %v1022_v38  ;;  %v1063_v54 = vmul.f32 0.00390625, %v1019_v14  ;;  %1375 = vst [vmem:[#allocation7 + $0x60] sm:$0xff] %v1311_v31  ;;  %1376 = vst [vmem:[#allocation7 + $0x68] sm:$0xff] %v1312_v28  ;;  %1678 = vrsqrt.f32 %v1093_v24 }
 0x294   :  { %v1227_v2 = vmul.f32 %v2538_v41, %v1144_v34  ;;  %v1228_v40 = vmul.f32 %v2540_v29, %v1145_v7  ;;  %v1669_v4 = vpop.eup %1668  ;;  %1680 = vrsqrt.f32 %v1080_v47  ;;  %v980_v18 = vpop.xlane.xlu0 %979 }
 0x295   :  { %v1096_v0 = vadd.f32 1e-05, %v1064_v49  ;;  %v1095_v53 = vadd.f32 1e-05, %v1063_v54  ;;  %v977_v35 = vpop.xlane.xlu1 %976  ;;  %v1671_v25 = vpop.eup %1670  ;;  %v1178_v19 = vmul.f32 %v1669_v4, %v2305_v20  ;;  %v1179_v10 = vmul.f32 %v1669_v4, %v2309_v39 }
 0x296   :  { %v1309_v30 = vadd.f32 %v2542_v26, %v1227_v2  ;;  %v1310_v37 = vadd.f32 %v2544_v8, %v1228_v40  ;;  %v1673_v60 = vpop.eup %1672  ;;  %v1176_v15 = vmul.f32 %v1671_v25, %v2283_v42  ;;  %v1177_v32 = vmul.f32 %v1671_v25, %v2297_v17 }
 0x297   :  { %1682 = vrsqrt.f32 %v1079_v6  ;;  %v1050_v21 = vmul.f32 0.00390625, %v980_v18  ;;  %v1261_v56 = vmul.f32 %v2538_v41, %v1178_v19  ;;  %v1262_v36 = vmul.f32 %v2540_v29, %v1179_v10 }
 0x298   :  { %1373 = vst [vmem:[#allocation7 + $0x50] sm:$0xff] %v1309_v30  ;;  %1374 = vst [vmem:[#allocation7 + $0x58] sm:$0xff] %v1310_v37  ;;  %v1150_v16 = vmul.f32 %v1673_v60, %v2337_v62  ;;  %v1151_v46 = vmul.f32 %v1673_v60, %v2341_v52  ;;  %v1259_v20 = vmul.f32 %v2538_v41, %v1176_v15  ;;  %1684 = vrsqrt.f32 %v1096_v0  ;;  %v1028_v45 = vpop.xlane.xlu0 %1027 }
 0x299   :  { %v1260_v39 = vmul.f32 %v2540_v29, %v1177_v32  ;;  %v1082_v42 = vadd.f32 1e-05, %v1050_v21  ;;  %v1025_v50 = vpop.xlane.xlu1 %1024  ;;  %v1343_v17 = vadd.f32 %v2542_v26, %v1261_v56  ;;  %v1344_v33 = vadd.f32 %v2544_v8, %v1262_v36  ;;  %v2984_v32 = vld [vmem:[#allocation31_spill] sm:$0xff] }
 0x29a   :  { %v1233_v57 = vmul.f32 %v2538_v41, %v1150_v16  ;;  %v1234_v13 = vmul.f32 %v2540_v29, %v1151_v46  ;;  %v1675_v11 = vpop.eup %1674  ;;  %v1341_v62 = vadd.f32 %v2542_v26, %v1259_v20  ;;  %1686 = vrsqrt.f32 %v1095_v53 }
 0x29b   :  { %v1342_v52 = vadd.f32 %v2544_v8, %v1260_v39  ;;  %v1049_v3 = vmul.f32 0.00390625, %v977_v35  ;;  %1407 = vst [vmem:[#allocation7 + $0x160] sm:$0xff] %v1343_v17  ;;  %1408 = vst [vmem:[#allocation7 + $0x168] sm:$0xff] %v1344_v33  ;;  %v1148_v38 = vmul.f32 %v1675_v11, %v2315_v51  ;;  %v1149_v14 = vmul.f32 %v1675_v11, %v2319_v23  ;;  %v2985_v39 = vld [vmem:[#allocation34_spill] sm:$0xff] }
 0x29c   :  { %v1315_v24 = vadd.f32 %v2542_v26, %v1233_v57  ;;  %v1316_v47 = vadd.f32 %v2544_v8, %v1234_v13  ;;  %v1677_v31 = vpop.eup %1676  ;;  %1405 = vst [vmem:[#allocation7 + $0x150] sm:$0xff] %v1341_v62  ;;  %1688 = vrsqrt.f32 %v1082_v42  ;;  %v1066_v34 = vmul.f32 0.00390625, %v1028_v45 }
 0x29d   :  { %1406 = vst [vmem:[#allocation7 + $0x158] sm:$0xff] %v1342_v52  ;;  %v1081_v28 = vadd.f32 1e-05, %v1049_v3  ;;  %v1065_v7 = vmul.f32 0.00390625, %v1025_v50  ;;  %v2638_v6 = vpop.xlane.xlu1 %982  ;;  %v1679_v49 = vpop.eup %1678  ;;  %v1231_v54 = vmul.f32 %v2538_v41, %v1148_v38  ;;  %v1232_v2 = vmul.f32 %v2540_v29, %v1149_v14  ;;  %v2987_v38 = vld [vmem:[#allocation32_spill] sm:$0xff] }
 0x29e   :  { %1379 = vst [vmem:[#allocation7 + $0x80] sm:$0xff] %v1315_v24  ;;  %1380 = vst [vmem:[#allocation7 + $0x88] sm:$0xff] %v1316_v47  ;;  %v1182_v51 = vmul.f32 %v1677_v31, %v2355_v63  ;;  %v1183_v23 = vmul.f32 %v1677_v31, %v2359_v5  ;;  %v1681_v40 = vpop.eup %1680  ;;  %v1180_v4 = vmul.f32 %v1679_v49, %v2329_v9  ;;  %v1098_v53 = vadd.f32 1e-05, %v1066_v34  ;;  %v986_v17 = vpop.xlane.xlu0 %985  ;;  %v2988_v31 = vld [vmem:[#allocation33_spill] sm:$0xff] }
 0x29f   :  { %v1181_v0 = vmul.f32 %v1679_v49, %v2333_v1  ;;  %1690 = vrsqrt.f32 %v1081_v28  ;;  %v1313_v18 = vadd.f32 %v2542_v26, %v1231_v54  ;;  %v1314_v35 = vadd.f32 %v2544_v8, %v1232_v2 }
 0x2a0   :  { %v1265_v25 = vmul.f32 %v2538_v41, %v1182_v51  ;;  %v1266_v30 = vmul.f32 %v2540_v29, %v1183_v23  ;;  %v1263_v63 = vmul.f32 %v2538_v41, %v1180_v4  ;;  %v1154_v19 = vmul.f32 %v1681_v40, %v2377_v12 }
 0x2a1   :  { %v1683_v37 = vpop.eup %1682  ;;  %v1264_v5 = vmul.f32 %v2540_v29, %v1181_v0  ;;  %v1155_v9 = vmul.f32 %v1681_v40, %v2381_v22  ;;  %v2654_v1 = vpop.xlane.xlu1 %1030  ;;  %1377 = vst [vmem:[#allocation7 + $0x70] sm:$0xff] %v1313_v18  ;;  %1378 = vst [vmem:[#allocation7 + $0x78] sm:$0xff] %v1314_v35  ;;  %1692 = vrsqrt.f32 %v1098_v53  ;;  %v1097_v45 = vadd.f32 1e-05, %v1065_v7  ;;  %v2989_v35 = vld [vmem:[#allocation11_spill] sm:$0xff] }
 0x2a2   :  { %v1347_v10 = vadd.f32 %v2542_v26, %v1265_v25  ;;  %v1348_v60 = vadd.f32 %v2544_v8, %v1266_v30  ;;  %v1152_v15 = vmul.f32 %v1683_v37, %v2363_v48  ;;  %v1153_v21 = vmul.f32 %v1683_v37, %v2984_v32  ;;  %v1685_v56 = vpop.eup %1684  ;;  %v2986_v48 = vld [vmem:[#allocation35_spill] sm:$0xff]  ;;  %v2990_v30 = vld [vmem:[#allocation13_spill] sm:$0xff]  ;;  %v1034_v37 = vpop.xlane.xlu0 %1033 }
 0x2a3   :  { %v1345_v36 = vadd.f32 %v2542_v26, %v1263_v63  ;;  %v1346_v16 = vadd.f32 %v2544_v8, %v1264_v5  ;;  %v1237_v12 = vmul.f32 %v2538_v41, %v1154_v19  ;;  %v1238_v22 = vmul.f32 %v2540_v29, %v1155_v9 }
 0x2a4   :  { %1411 = vst [vmem:[#allocation7 + $0x180] sm:$0xff] %v1347_v10  ;;  %1412 = vst [vmem:[#allocation7 + $0x188] sm:$0xff] %v1348_v60  ;;  %v1235_v46 = vmul.f32 %v2538_v41, %v1152_v15  ;;  %v1236_v20 = vmul.f32 %v2540_v29, %v1153_v21  ;;  %v1186_v42 = vmul.f32 %v1685_v56, %v2985_v39  ;;  %v1687_v33 = vpop.eup %1686  ;;  %1694 = vrsqrt.f32 %v1097_v45  ;;  %v2991_v39 = vld [vmem:[#allocation17_spill] sm:$0xff] }
 0x2a5   :  { %v1187_v50 = vmul.f32 %v1685_v56, %v2986_v48  ;;  %1409 = vst [vmem:[#allocation7 + $0x170] sm:$0xff] %v1345_v36  ;;  %1410 = vst [vmem:[#allocation7 + $0x178] sm:$0xff] %v1346_v16  ;;  %v1319_v57 = vadd.f32 %v2542_v26, %v1237_v12  ;;  %v1320_v13 = vadd.f32 %v2544_v8, %v1238_v22  ;;  %v989_v24 = vpop.xlane.xlu1 %988  ;;  %v1052_v34 = vmul.f32 0.00390625, %v986_v17 }
 0x2a6   :  { %v1317_v11 = vadd.f32 %v2542_v26, %v1235_v46  ;;  %v1318_v62 = vadd.f32 %v2544_v8, %v1236_v20  ;;  %v1269_v52 = vmul.f32 %v2538_v41, %v1186_v42  ;;  %v1689_v47 = vpop.eup %1688  ;;  %v1184_v14 = vmul.f32 %v1687_v33, %v2987_v38 }
 0x2a7   :  { %v1270_v3 = vmul.f32 %v2540_v29, %v1187_v50  ;;  %1383 = vst [vmem:[#allocation7 + $0xa0] sm:$0xff] %v1319_v57  ;;  %1384 = vst [vmem:[#allocation7 + $0xa8] sm:$0xff] %v1320_v13  ;;  %v1185_v28 = vmul.f32 %v1687_v33, %v2988_v31  ;;  %v1158_v54 = vmul.f32 %v1689_v47, %v2431_v44  ;;  %v1084_v4 = vadd.f32 1e-05, %v1052_v34  ;;  %v2992_v33 = vld [vmem:[#allocation12_spill] sm:$0xff]  ;;  %v2993_v13 = vld [vmem:[#allocation15_spill] sm:$0xff] }
 0x2a8   :  { %1381 = vst [vmem:[#allocation7 + $0x90] sm:$0xff] %v1317_v11  ;;  %1382 = vst [vmem:[#allocation7 + $0x98] sm:$0xff] %v1318_v62  ;;  %v1351_v7 = vadd.f32 %v2542_v26, %v1269_v52  ;;  %v1159_v2 = vmul.f32 %v1689_v47, %v2435_v27  ;;  %v1267_v23 = vmul.f32 %v2538_v41, %v1184_v14  ;;  %v1051_v0 = vmul.f32 0.00390625, %v2638_v6 }
 0x2a9   :  { %v1352_v49 = vadd.f32 %v2544_v8, %v1270_v3  ;;  %v1691_v51 = vpop.eup %1690  ;;  %v1268_v40 = vmul.f32 %v2540_v29, %v1185_v28  ;;  %v1241_v53 = vmul.f32 %v2538_v41, %v1158_v54  ;;  %1696 = vrsqrt.f32 %v1084_v4  ;;  %v1037_v60 = vpop.xlane.xlu1 %1036  ;;  %v2994_v54 = vld [vmem:[#allocation14_spill] sm:$0xff] }
 0x2aa   :  { %1415 = vst [vmem:[#allocation7 + $0x1a0] sm:$0xff] %v1351_v7  ;;  %v1242_v18 = vmul.f32 %v2540_v29, %v1159_v2  ;;  %v1156_v25 = vmul.f32 %v1691_v51, %v2989_v35  ;;  %v1157_v44 = vmul.f32 %v1691_v51, %v2990_v30  ;;  %v1349_v27 = vadd.f32 %v2542_v26, %v1267_v23 }
 0x2ab   :  { %1416 = vst [vmem:[#allocation7 + $0x1a8] sm:$0xff] %v1352_v49  ;;  %v1350_v63 = vadd.f32 %v2544_v8, %v1268_v40  ;;  %v1083_v5 = vadd.f32 1e-05, %v1051_v0  ;;  %v1323_v19 = vadd.f32 %v2542_v26, %v1241_v53  ;;  %v1068_v15 = vmul.f32 0.00390625, %v1034_v37  ;;  %v1693_v16 = vpop.eup %1692 }
 0x2ac   :  { %v1324_v6 = vadd.f32 %v2544_v8, %v1242_v18  ;;  %v1239_v9 = vmul.f32 %v2538_v41, %v1156_v25  ;;  %v1240_v10 = vmul.f32 %v2540_v29, %v1157_v44  ;;  %1413 = vst [vmem:[#allocation7 + $0x190] sm:$0xff] %v1349_v27  ;;  %v1067_v32 = vmul.f32 0.00390625, %v2654_v1  ;;  %v2996_v44 = vld [vmem:[#allocation16_spill] sm:$0xff]  ;;  %v2997_v27 = vld [vmem:[#allocation18_spill] sm:$0xff] }
 0x2ad   :  { %1414 = vst [vmem:[#allocation7 + $0x198] sm:$0xff] %v1350_v63  ;;  %1698 = vrsqrt.f32 %v1083_v5  ;;  %v1053_v21 = vmul.f32 0.00390625, %v989_v24  ;;  %1387 = vst [vmem:[#allocation7 + $0xc0] sm:$0xff] %v1323_v19  ;;  %v1100_v12 = vadd.f32 1e-05, %v1068_v15  ;;  %v1069_v46 = vmul.f32 0.00390625, %v1037_v60 }
 0x2ae   :  { %1388 = vst [vmem:[#allocation7 + $0xc8] sm:$0xff] %v1324_v6  ;;  %v1321_v56 = vadd.f32 %v2542_v26, %v1239_v9  ;;  %v1322_v36 = vadd.f32 %v2544_v8, %v1240_v10  ;;  %v1099_v22 = vadd.f32 1e-05, %v1067_v32  ;;  %v1190_v20 = vmul.f32 %v1693_v16, %v2449_v43  ;;  %v1695_v48 = vpop.eup %1694  ;;  %v2998_v60 = vld [vmem:[#allocation21_spill] sm:$0xff]  ;;  %v2999_v32 = vld [vmem:[#allocation20_spill] sm:$0xff] }
 0x2af   :  { %v1191_v42 = vmul.f32 %v1693_v16, %v2991_v39  ;;  %1700 = vrsqrt.f32 %v1100_v12  ;;  %v1085_v1 = vadd.f32 1e-05, %v1053_v21  ;;  %v1188_v57 = vmul.f32 %v1695_v48, %v2992_v33  ;;  %v3000_v16 = vld [vmem:[#allocation22_spill] sm:$0xff] }
 0x2b0   :  { %1385 = vst [vmem:[#allocation7 + $0xb0] sm:$0xff] %v1321_v56  ;;  %1386 = vst [vmem:[#allocation7 + $0xb8] sm:$0xff] %v1322_v36  ;;  %v1273_v50 = vmul.f32 %v2538_v41, %v1190_v20  ;;  %v1189_v45 = vmul.f32 %v1695_v48, %v2993_v13  ;;  %1702 = vrsqrt.f32 %v1099_v22  ;;  %v1101_v11 = vadd.f32 1e-05, %v1069_v46  ;;  %v3001_v22 = vld [vmem:[#allocation23_spill] sm:$0xff] }
 0x2b1   :  { %v1274_v17 = vmul.f32 %v2540_v29, %v1191_v42  ;;  %v1271_v43 = vmul.f32 %v2538_v41, %v1188_v57  ;;  %1704 = vrsqrt.f32 %v1085_v1 }
 0x2b2   :  { %v1355_v62 = vadd.f32 %v2542_v26, %v1273_v50  ;;  %v1272_v3 = vmul.f32 %v2540_v29, %v1189_v45  ;;  %1706 = vrsqrt.f32 %v1101_v11 }
 0x2b3   :  { %v1356_v52 = vadd.f32 %v2544_v8, %v1274_v17  ;;  %v1697_v24 = vpop.eup %1696  ;;  %v1353_v47 = vadd.f32 %v2542_v26, %v1271_v43 }
 0x2b4   :  { %1419 = vst [vmem:[#allocation7 + $0x1c0] sm:$0xff] %v1355_v62  ;;  %v1354_v38 = vadd.f32 %v2544_v8, %v1272_v3  ;;  %v1162_v14 = vmul.f32 %v1697_v24, %v2481_v55  ;;  %v1163_v31 = vmul.f32 %v1697_v24, %v2485_v58 }
 0x2b5   :  { %1420 = vst [vmem:[#allocation7 + $0x1c8] sm:$0xff] %v1356_v52  ;;  %1417 = vst [vmem:[#allocation7 + $0x1b0] sm:$0xff] %v1353_v47 }
 0x2b6   :  { %1418 = vst [vmem:[#allocation7 + $0x1b8] sm:$0xff] %v1354_v38  ;;  %v1245_v34 = vmul.f32 %v2538_v41, %v1162_v14  ;;  %v1246_v7 = vmul.f32 %v2540_v29, %v1163_v31 }
 0x2b7   :  { %v1699_v28 = vpop.eup %1698 }
 0x2b8   :  { %v1160_v49 = vmul.f32 %v1699_v28, %v2459_v61  ;;  %v1161_v2 = vmul.f32 %v1699_v28, %v2994_v54  ;;  %v1327_v51 = vadd.f32 %v2542_v26, %v1245_v34  ;;  %v1328_v23 = vadd.f32 %v2544_v8, %v1246_v7  ;;  %v2995_v61 = vld [vmem:[#allocation19_spill] sm:$0xff] }
 0x2b9   :  { %v1701_v40 = vpop.eup %1700 }
 0x2ba   :  { %v1243_v55 = vmul.f32 %v2538_v41, %v1160_v49  ;;  %v1244_v58 = vmul.f32 %v2540_v29, %v1161_v2  ;;  %1391 = vst [vmem:[#allocation7 + $0xe0] sm:$0xff] %v1327_v51  ;;  %1392 = vst [vmem:[#allocation7 + $0xe8] sm:$0xff] %v1328_v23  ;;  %v1194_v53 = vmul.f32 %v1701_v40, %v2497_v59  ;;  %v1703_v35 = vpop.eup %1702 }
 0x2bb   :  { %v1195_v18 = vmul.f32 %v1701_v40, %v2995_v61  ;;  %v1192_v37 = vmul.f32 %v1703_v35, %v2996_v44  ;;  %v1193_v63 = vmul.f32 %v1703_v35, %v2997_v27  ;;  %v1705_v5 = vpop.eup %1704 }
 0x2bc   :  { %v1325_v4 = vadd.f32 %v2542_v26, %v1243_v55  ;;  %v1326_v0 = vadd.f32 %v2544_v8, %v1244_v58  ;;  %v1277_v25 = vmul.f32 %v2538_v41, %v1194_v53  ;;  %v1707_v10 = vpop.eup %1706  ;;  %v1164_v15 = vmul.f32 %v1705_v5, %v2998_v60 }
 0x2bd   :  { %v1278_v30 = vmul.f32 %v2540_v29, %v1195_v18  ;;  %v1275_v59 = vmul.f32 %v2538_v41, %v1192_v37  ;;  %v1276_v9 = vmul.f32 %v2540_v29, %v1193_v63  ;;  %v1165_v21 = vmul.f32 %v1705_v5, %v2999_v32 }
 0x2be   :  { %1389 = vst [vmem:[#allocation7 + $0xd0] sm:$0xff] %v1325_v4  ;;  %1390 = vst [vmem:[#allocation7 + $0xd8] sm:$0xff] %v1326_v0  ;;  %v1359_v19 = vadd.f32 %v2542_v26, %v1277_v25  ;;  %v1196_v12 = vmul.f32 %v1707_v10, %v3000_v16  ;;  %v1197_v46 = vmul.f32 %v1707_v10, %v3001_v22 }
 0x2bf   :  { %v1360_v6 = vadd.f32 %v2544_v8, %v1278_v30  ;;  %v1357_v56 = vadd.f32 %v2542_v26, %v1275_v59  ;;  %v1358_v36 = vadd.f32 %v2544_v8, %v1276_v9  ;;  %v1247_v20 = vmul.f32 %v2538_v41, %v1164_v15 }
 0x2c0   :  { %1423 = vst [vmem:[#allocation7 + $0x1e0] sm:$0xff] %v1359_v19  ;;  %v1248_v39 = vmul.f32 %v2540_v29, %v1165_v21  ;;  %v1279_v42 = vmul.f32 %v2538_v41, %v1196_v12  ;;  %v1280_v48 = vmul.f32 %v2540_v29, %v1197_v46 }
 0x2c1   :  { %1424 = vst [vmem:[#allocation7 + $0x1e8] sm:$0xff] %v1360_v6  ;;  %1421 = vst [vmem:[#allocation7 + $0x1d0] sm:$0xff] %v1357_v56  ;;  %v1329_v1 = vadd.f32 %v2542_v26, %v1247_v20 }
 0x2c2   :  { %1422 = vst [vmem:[#allocation7 + $0x1d8] sm:$0xff] %v1358_v36  ;;  %v1330_v50 = vadd.f32 %v2544_v8, %v1248_v39  ;;  %v1361_v17 = vadd.f32 %v2542_v26, %v1279_v42  ;;  %v1362_v33 = vadd.f32 %v2544_v8, %v1280_v48 }
 0x2c3   :  { %1393 = vst [vmem:[#allocation7 + $0xf0] sm:$0xff] %v1329_v1 }
 0x2c4   :  { %1394 = vst [vmem:[#allocation7 + $0xf8] sm:$0xff] %v1330_v50  ;;  %1425 = vst [vmem:[#allocation7 + $0x1f0] sm:$0xff] %v1361_v17 }
 0x2c5   :  { %1426 = vst [vmem:[#allocation7 + $0x1f8] sm:$0xff] %v1362_v33 }
 0x2c6   :  { %1763 = shalt.err (!%p1760_p6)
}
 0x2c7   :  { %s1764_s15 = scalar_lea.hbm %s2759_s3, 8192 }
 0x2c8   :  { %p1765_p7 = scmp.ne.s32.totalorder %s2759_s3, %s1764_s15  ;;  %p1768_p8 = scmp.lt.u32.totalorder %s1764_s15, %s2759_s3 }
 0x2ca   :  { %p1770_p9 = pnand %p1768_p8, %p1765_p7 }
 0x2cc   :  { %1773 = shalt.err (!%p1770_p9)
}
 0x2cd   :  { %s1785_s20 = smov 256   ;;  %s1786_s21 = smov 16  }
 0x2ce   :  { %1438 = dma.vmem_to_hbm [thread:$0]  %s1433_s11, 8192, %s2759_s3, [#allocation4], %s1785_s20, %s1785_s20, %s1786_s21  }
 0x2cf   :  { %1778 = dma.done.wait [#allocation4], 8192  }
 0x2d0   :  { %1779 = vsyncadd [#allocation4], 4294959104 }
 0x2d1   :  { %1442 = vsyncpa [#allocation3], 1 }
 0x2d2   :  { %1443 = vsyncpa [#allocation6], 1 }
 0x2d3   :  { %1444 = vsyncpa [#allocation4], 1 }

</bundles_post_ra>
